<compile_context>
chip_gen: v6e
topology: v6e:2x2x1
jax: 0.10.0
libtpu: 0.0.40
codegen_flags: <defaults>
</compile_context>

<pallas_src>
import math

import jax
import jax.numpy as jnp
from jax.experimental import pallas as pl
from jax.experimental.pallas import tpu as pltpu

# ---- small synthetic BERT config (stands in for bert-base-uncased) ----------
B = 2              # batch
S = 8              # sequence length
H = 128            # hidden size (stands in for 768)
NUM_HEADS = 2      # stands in for 12
HEAD_DIM = H // NUM_HEADS
INTER = 512        # FFN intermediate (stands in for 3072)
NUM_LAYERS = 2     # stands in for 12 encoder layers
VOCAB = 64
NUM_CLASSES = 3
FC_PAD = 128       # lane-dense padded classifier width (sliced outside)
LN_EPS = 1e-12


# --------------------------- in-kernel helpers --------------------------------
def _layernorm(x, g, b):
    mu = jnp.mean(x, axis=-1, keepdims=True)
    var = jnp.mean((x - mu) ** 2, axis=-1, keepdims=True)
    return (x - mu) * jax.lax.rsqrt(var + LN_EPS) * g + b


def _gelu(x):
    # TODO(synk): HF BERT uses exact erf-based GELU; tanh approximation kept
    # since erf is not reliably lowered by Mosaic.
    c = math.sqrt(2.0 / math.pi)
    return 0.5 * x * (1.0 + jnp.tanh(c * (x + 0.044715 * x * x * x)))


# --------------------------- fused encoder-stack kernel -----------------------
def bert_stack_kernel(emb_ref, mask_ref,
                      wqkv_ref, bqkv_ref, wo_ref, bo_ref, ln1g_ref, ln1b_ref,
                      w1_ref, b1_ref, w2_ref, b2_ref, ln2g_ref, ln2b_ref,
                      wp_ref, bp_ref, wf_ref, bf_ref,
                      logits_ref,
                      hid_ref, ctx_ref):
    layer = pl.program_id(0)

    @pl.when(layer == 0)
    def _():
        hid_ref[...] = emb_ref[...]          # hidden state becomes VMEM-resident

    x = hid_ref[...]                          # [B*S, H] f32
    x_bf = x.astype(jnp.bfloat16)

    # fused QKV projection: one (H, 3H) bf16 MXU pass, f32 accumulation
    qkv = (jnp.dot(x_bf, wqkv_ref[0], preferred_element_type=jnp.float32)
           + bqkv_ref[0])
    q = qkv[:, 0:H] * (1.0 / math.sqrt(HEAD_DIM))
    k = qkv[:, H:2 * H]
    v = qkv[:, 2 * H:3 * H]

    # attention: static unroll over batch and heads; context written in place
    for b in range(B):
        rows = slice(b * S, (b + 1) * S)
        mask_b = jnp.broadcast_to(mask_ref[b], (S, S))   # hoisted out of head loop
        qb, kb, vb = q[rows, :], k[rows, :], v[rows, :]
        for h in range(NUM_HEADS):
            cols = slice(h * HEAD_DIM, (h + 1) * HEAD_DIM)
            qh, kh, vh = qb[:, cols], kb[:, cols], vb[:, cols]
            scores = jax.lax.dot_general(                # q @ k^T without .T
                qh, kh, (((1,), (1,)), ((), ())),
                preferred_element_type=jnp.float32)
            scores = scores + mask_b
            scores = scores - jnp.max(scores, axis=-1, keepdims=True)
            p = jnp.exp(scores)
            p = p * pl.reciprocal(jnp.sum(p, axis=-1, keepdims=True), approx=True)
            ctx_ref[rows, cols] = jnp.dot(p, vh, preferred_element_type=jnp.float32)

    attn_out = (jnp.dot(ctx_ref[...].astype(jnp.bfloat16), wo_ref[0],
                        preferred_element_type=jnp.float32) + bo_ref[0])
    y = _layernorm(x + attn_out, ln1g_ref[0], ln1b_ref[0])

    h1 = _gelu(jnp.dot(y.astype(jnp.bfloat16), w1_ref[0],
                       preferred_element_type=jnp.float32) + b1_ref[0])
    h2 = (jnp.dot(h1.astype(jnp.bfloat16), w2_ref[0],
                  preferred_element_type=jnp.float32) + b2_ref[0])
    new_hid = _layernorm(y + h2, ln2g_ref[0], ln2b_ref[0])
    hid_ref[...] = new_hid

    # epilogue (last layer only): pooler tanh + classifier, lane-dense output
    @pl.when(layer == pl.num_programs(0) - 1)
    def _():
        cls = jnp.concatenate(
            [new_hid[b * S:b * S + 1, :] for b in range(B)], axis=0)   # [B, H]
        pooled = jnp.tanh(
            jnp.dot(cls.astype(jnp.bfloat16), wp_ref[...],
                    preferred_element_type=jnp.float32) + bp_ref[...])
        # dropout_emb / dropout_fc are identity in eval mode
        logits_ref[...] = (
            jnp.dot(pooled.astype(jnp.bfloat16), wf_ref[...],
                    preferred_element_type=jnp.float32) + bf_ref[...])


_LAYER_KEYS = ("wqkv", "bqkv", "wo", "bo", "ln1g", "ln1b",
               "w1", "b1", "w2", "b2", "ln2g", "ln2b")
_HEAD_KEYS = ("pool_w", "pool_b", "fc_w_pad", "fc_b_pad")


def _layer_spec(a):
    # one layer's slab per grid step; the pipeline prefetches layer l+1
    return pl.BlockSpec((1,) + a.shape[1:],
                        lambda l, n=a.ndim: (l,) + (0,) * (n - 1))


def _const_spec(a):
    # full array, same block every layer (fetched once, stays resident)
    return pl.BlockSpec(a.shape, lambda l, n=a.ndim: (0,) * n)


def bert_encoder_pooler_fc(emb_flat, mask_add, params):
    layer_ws = [params[k] for k in _LAYER_KEYS]
    head_ws = [params[k] for k in _HEAD_KEYS]
    in_specs = ([_const_spec(emb_flat), _const_spec(mask_add)]
                + [_layer_spec(a) for a in layer_ws]
                + [_const_spec(a) for a in head_ws])
    logits_pad = pl.pallas_call(
        bert_stack_kernel,
        out_shape=jax.ShapeDtypeStruct((B, FC_PAD), jnp.float32),
        grid=(NUM_LAYERS,),
        in_specs=in_specs,
        out_specs=pl.BlockSpec((B, FC_PAD), lambda l: (0, 0)),
        scratch_shapes=[pltpu.VMEM((B * S, H), jnp.float32),   # resident hidden
                        pltpu.VMEM((B * S, H), jnp.float32)],  # attention context
        compiler_params=pltpu.CompilerParams(
            dimension_semantics=("arbitrary",)),
    )(emb_flat, mask_add, *layer_ws, *head_ws)
    return logits_pad[:, :NUM_CLASSES]


# --------------------------- params & glue ------------------------------------
def init_params(key):
    def nrm(k, shape, dtype=jnp.float32):
        return (0.02 * jax.random.normal(k, shape, dtype=jnp.float32)).astype(dtype)

    keys = iter(jax.random.split(key, 16))
    L = NUM_LAYERS
    fc_w = 0.02 * jax.random.normal(next(keys), (H, NUM_CLASSES), jnp.float32)
    fc_w_pad = jnp.zeros((H, FC_PAD), jnp.float32).at[:, :NUM_CLASSES].set(fc_w)
    return {
        "word_emb": nrm(next(keys), (VOCAB, H)),
        "pos_emb": nrm(next(keys), (S, H)),
        "type_emb": nrm(next(keys), (2, H)),
        "emb_ln_g": jnp.ones((1, 1, H), jnp.float32),
        "emb_ln_b": jnp.zeros((1, 1, H), jnp.float32),
        # per-layer weights stacked on a leading layer axis; matmul weights bf16
        "wqkv": nrm(next(keys), (L, H, 3 * H), jnp.bfloat16),
        "bqkv": jnp.zeros((L, 1, 3 * H), jnp.float32),
        "wo": nrm(next(keys), (L, H, H), jnp.bfloat16),
        "bo": jnp.zeros((L, 1, H), jnp.float32),
        "ln1g": jnp.ones((L, 1, H), jnp.float32),
        "ln1b": jnp.zeros((L, 1, H), jnp.float32),
        "w1": nrm(next(keys), (L, H, INTER), jnp.bfloat16),
        "b1": jnp.zeros((L, 1, INTER), jnp.float32),
        "w2": nrm(next(keys), (L, INTER, H), jnp.bfloat16),
        "b2": jnp.zeros((L, 1, H), jnp.float32),
        "ln2g": jnp.ones((L, 1, H), jnp.float32),
        "ln2b": jnp.zeros((L, 1, H), jnp.float32),
        # pooler + classifier (classifier padded to a lane-dense width)
        "pool_w": nrm(next(keys), (H, H), jnp.bfloat16),
        "pool_b": jnp.zeros((1, H), jnp.float32),
        "fc_w_pad": fc_w_pad.astype(jnp.bfloat16),
        "fc_b_pad": jnp.zeros((1, FC_PAD), jnp.float32),
    }


def bert_embeddings(params, input_ids, token_type_ids):
    pos = jnp.arange(S)[None, :]                                   # [1, S]
    emb = (jnp.take(params["word_emb"], input_ids, axis=0)
           + jnp.take(params["pos_emb"], pos, axis=0)
           + jnp.take(params["type_emb"], token_type_ids, axis=0)) # [B, S, H]
    mu = jnp.mean(emb, axis=-1, keepdims=True)
    var = jnp.mean((emb - mu) ** 2, axis=-1, keepdims=True)
    return ((emb - mu) * jax.lax.rsqrt(var + LN_EPS) * params["emb_ln_g"]
            + params["emb_ln_b"])


def bert_nli_forward(params, input_ids, token_type_ids, attention_mask):
    hidden = bert_embeddings(params, input_ids, token_type_ids)    # [B, S, H]
    emb_flat = hidden.reshape(B * S, H)                            # batch flattened
    mask_add = ((1.0 - attention_mask.astype(jnp.float32))
                * -10000.0).reshape(B, 1, S)                       # additive mask
    return bert_encoder_pooler_fc(emb_flat, mask_add, params)


if __name__ == "__main__":
    root = jax.random.PRNGKey(0)
    k_param, k_ids, k_type = jax.random.split(root, 3)

    params = init_params(k_param)
    input_ids = jax.random.randint(k_ids, (B, S), 0, VOCAB, dtype=jnp.int32)
    token_type_ids = jnp.concatenate(
        [jnp.zeros((B, S // 2), jnp.int32), jnp.ones((B, S // 2), jnp.int32)],
        axis=1)
    attention_mask = jnp.array([[1] * S, [1] * (S - 2) + [0] * 2], dtype=jnp.int32)

    logits = bert_nli_forward(params, input_ids, token_type_ids, attention_mask)
    logits = jax.block_until_ready(logits)
    assert logits.shape == (B, NUM_CLASSES) and logits.dtype == jnp.float32
    assert bool(jnp.all(jnp.isfinite(logits)))
    print("KERNEL_OK")
</pallas_src>

<mosaic_0001>
module attributes {stable_mosaic.version = 11 : i64} {
  func.func @bert_stack_kernel(%arg0: i32, %arg1: memref<16x128xf32, #tpu.memory_space<vmem>>, %arg2: memref<2x1x8xf32, #tpu.memory_space<vmem>>, %arg3: memref<1x128x384xbf16, #tpu.memory_space<vmem>>, %arg4: memref<1x1x384xf32, #tpu.memory_space<vmem>>, %arg5: memref<1x128x128xbf16, #tpu.memory_space<vmem>>, %arg6: memref<1x1x128xf32, #tpu.memory_space<vmem>>, %arg7: memref<1x1x128xf32, #tpu.memory_space<vmem>>, %arg8: memref<1x1x128xf32, #tpu.memory_space<vmem>>, %arg9: memref<1x128x512xbf16, #tpu.memory_space<vmem>>, %arg10: memref<1x1x512xf32, #tpu.memory_space<vmem>>, %arg11: memref<1x512x128xbf16, #tpu.memory_space<vmem>>, %arg12: memref<1x1x128xf32, #tpu.memory_space<vmem>>, %arg13: memref<1x1x128xf32, #tpu.memory_space<vmem>>, %arg14: memref<1x1x128xf32, #tpu.memory_space<vmem>>, %arg15: memref<128x128xbf16, #tpu.memory_space<vmem>>, %arg16: memref<1x128xf32, #tpu.memory_space<vmem>>, %arg17: memref<128x128xbf16, #tpu.memory_space<vmem>>, %arg18: memref<1x128xf32, #tpu.memory_space<vmem>>, %arg19: memref<2x128xf32, #tpu.memory_space<vmem>>, %arg20: memref<16x128xf32, #tpu.memory_space<vmem>>, %arg21: memref<16x128xf32, #tpu.memory_space<vmem>>) attributes {dimension_semantics = [#tpu.dimension_semantics<arbitrary>], iteration_bounds = array<i64: 2>, scalar_prefetch = 0 : i64, scratch_operands = 2 : i64, tpu.core_type = #tpu.core_type<tc>, window_params = [{pipeline_mode = #tpu.pipeline_mode<synchronous>, transform_indices = @transform_0, window_bounds = array<i64: 16, 128>}, {pipeline_mode = #tpu.pipeline_mode<synchronous>, transform_indices = @transform_1, window_bounds = array<i64: 2, 1, 8>}, {transform_indices = @transform_2, window_bounds = array<i64: 1, 128, 384>}, {transform_indices = @transform_3, window_bounds = array<i64: 1, 1, 384>}, {transform_indices = @transform_4, window_bounds = array<i64: 1, 128, 128>}, {transform_indices = @transform_5, window_bounds = array<i64: 1, 1, 128>}, {transform_indices = @transform_6, window_bounds = array<i64: 1, 1, 128>}, {transform_indices = @transform_7, window_bounds = array<i64: 1, 1, 128>}, {transform_indices = @transform_8, window_bounds = array<i64: 1, 128, 512>}, {transform_indices = @transform_9, window_bounds = array<i64: 1, 1, 512>}, {transform_indices = @transform_10, window_bounds = array<i64: 1, 512, 128>}, {transform_indices = @transform_11, window_bounds = array<i64: 1, 1, 128>}, {transform_indices = @transform_12, window_bounds = array<i64: 1, 1, 128>}, {transform_indices = @transform_13, window_bounds = array<i64: 1, 1, 128>}, {pipeline_mode = #tpu.pipeline_mode<synchronous>, transform_indices = @transform_14, window_bounds = array<i64: 128, 128>}, {pipeline_mode = #tpu.pipeline_mode<synchronous>, transform_indices = @transform_15, window_bounds = array<i64: 1, 128>}, {pipeline_mode = #tpu.pipeline_mode<synchronous>, transform_indices = @transform_16, window_bounds = array<i64: 128, 128>}, {pipeline_mode = #tpu.pipeline_mode<synchronous>, transform_indices = @transform_17, window_bounds = array<i64: 1, 128>}, {pipeline_mode = #tpu.pipeline_mode<synchronous>, transform_indices = @transform_18, window_bounds = array<i64: 2, 128>}]} {
    %c0_i32 = arith.constant 0 : i32
    %0 = arith.cmpi eq, %arg0, %c0_i32 : i32
    %1 = arith.extui %0 : i1 to i32
    %c0_i32_0 = arith.constant 0 : i32
    %2 = arith.cmpi ne, %1, %c0_i32_0 : i32
    scf.if %2 {
      %c0_88 = arith.constant 0 : index
      %c0_89 = arith.constant 0 : index
      %195 = vector.load %arg1[%c0_88, %c0_89] : memref<16x128xf32, #tpu.memory_space<vmem>>, vector<16x128xf32>
      %c0_90 = arith.constant 0 : index
      %c0_91 = arith.constant 0 : index
      %196 = vector.load %arg20[%c0_90, %c0_91] : memref<16x128xf32, #tpu.memory_space<vmem>>, vector<16x128xf32>
      tpu.vector_store %arg20[%c0_90, %c0_91], %195 {strides = array<i32>} : memref<16x128xf32, #tpu.memory_space<vmem>>, vector<16x128xf32>,
    } else {
    }
    %c0 = arith.constant 0 : index
    %c0_1 = arith.constant 0 : index
    %3 = vector.load %arg20[%c0, %c0_1] : memref<16x128xf32, #tpu.memory_space<vmem>>, vector<16x128xf32>
    %4 = arith.truncf %3 : vector<16x128xf32> to vector<16x128xbf16>
    %c0_2 = arith.constant 0 : index
    %c0_3 = arith.constant 0 : index
    %c0_4 = arith.constant 0 : index
    %5 = vector.load %arg3[%c0_2, %c0_3, %c0_4] : memref<1x128x384xbf16, #tpu.memory_space<vmem>>, vector<1x128x384xbf16>
    %6 = vector.shape_cast %5 : vector<1x128x384xbf16> to vector<128x384xbf16>
    %cst = arith.constant dense<0.000000e+00> : vector<16x384xf32>
    %7 = tpu.matmul %4, %6, %cst {dimension_numbers = #tpu.dot_dimension_numbers<[1], [0], [0], [1], [0, 0, 1, 1], [], []>} : vector<16x128xbf16>, vector<128x384xbf16>, vector<16x384xf32> -> vector<16x384xf32>
    %c0_5 = arith.constant 0 : index
    %c0_6 = arith.constant 0 : index
    %c0_7 = arith.constant 0 : index
    %8 = vector.load %arg4[%c0_5, %c0_6, %c0_7] : memref<1x1x384xf32, #tpu.memory_space<vmem>>, vector<1x1x384xf32>
    %9 = vector.shape_cast %8 : vector<1x1x384xf32> to vector<1x384xf32>
    %10 = vector.broadcast %9 : vector<1x384xf32> to vector<16x384xf32>
    %11 = arith.addf %7, %10 : vector<16x384xf32>
    %12 = vector.extract_strided_slice %11 {offsets = [0, 0], sizes = [16, 128], strides = [1, 1]} : vector<16x384xf32> to vector<16x128xf32>
    %cst_8 = arith.constant 1.250000e-01 : f32
    %13 = vector.broadcast %cst_8 : f32 to vector<16x128xf32>
    %14 = arith.mulf %12, %13 : vector<16x128xf32>
    %15 = vector.extract_strided_slice %11 {offsets = [0, 128], sizes = [16, 128], strides = [1, 1]} : vector<16x384xf32> to vector<16x128xf32>
    %16 = vector.extract_strided_slice %11 {offsets = [0, 256], sizes = [16, 128], strides = [1, 1]} : vector<16x384xf32> to vector<16x128xf32>
    %c0_9 = arith.constant 0 : index
    %c0_10 = arith.constant 0 : index
    %c0_11 = arith.constant 0 : index
    %17 = vector.load %arg2[%c0_9, %c0_10, %c0_11] : memref<2x1x8xf32, #tpu.memory_space<vmem>>, vector<1x1x8xf32>
    %18 = vector.shape_cast %17 : vector<1x1x8xf32> to vector<1x8xf32>
    %19 = vector.shape_cast %18 : vector<1x8xf32> to vector<1x8xf32>
    %20 = vector.broadcast %19 : vector<1x8xf32> to vector<8x8xf32>
    %21 = vector.extract_strided_slice %14 {offsets = [0, 0], sizes = [8, 128], strides = [1, 1]} : vector<16x128xf32> to vector<8x128xf32>
    %22 = vector.extract_strided_slice %15 {offsets = [0, 0], sizes = [8, 128], strides = [1, 1]} : vector<16x128xf32> to vector<8x128xf32>
    %23 = vector.extract_strided_slice %16 {offsets = [0, 0], sizes = [8, 128], strides = [1, 1]} : vector<16x128xf32> to vector<8x128xf32>
    %24 = vector.extract_strided_slice %21 {offsets = [0, 0], sizes = [8, 64], strides = [1, 1]} : vector<8x128xf32> to vector<8x64xf32>
    %25 = vector.extract_strided_slice %22 {offsets = [0, 0], sizes = [8, 64], strides = [1, 1]} : vector<8x128xf32> to vector<8x64xf32>
    %26 = vector.extract_strided_slice %23 {offsets = [0, 0], sizes = [8, 64], strides = [1, 1]} : vector<8x128xf32> to vector<8x64xf32>
    %cst_12 = arith.constant dense<0.000000e+00> : vector<8x8xf32>
    %27 = tpu.matmul %24, %25, %cst_12 {dimension_numbers = #tpu.dot_dimension_numbers<[1], [1], [0], [0], [0, 0, 1, 0], [], []>} : vector<8x64xf32>, vector<8x64xf32>, vector<8x8xf32> -> vector<8x8xf32>
    %28 = arith.addf %27, %20 : vector<8x8xf32>
    %cst_13 = arith.constant dense<0xFF800000> : vector<8xf32>
    %29 = vector.multi_reduction <maximumf>, %28, %cst_13 [1] : vector<8x8xf32> to vector<8xf32>
    %30 = vector.shape_cast %29 : vector<8xf32> to vector<8x1xf32>
    %31 = vector.broadcast %30 : vector<8x1xf32> to vector<8x8xf32>
    %32 = arith.subf %28, %31 : vector<8x8xf32>
    %33 = math.exp %32 : vector<8x8xf32>
    %cst_14 = arith.constant dense<0.000000e+00> : vector<8xf32>
    %34 = vector.multi_reduction <add>, %33, %cst_14 [1] : vector<8x8xf32> to vector<8xf32>
    %35 = vector.shape_cast %34 : vector<8xf32> to vector<8x1xf32>
    %36 = tpu.reciprocal %35 {approx = true} : vector<8x1xf32> -> vector<8x1xf32>
    %37 = vector.broadcast %36 : vector<8x1xf32> to vector<8x8xf32>
    %38 = arith.mulf %33, %37 : vector<8x8xf32>
    %cst_15 = arith.constant dense<0.000000e+00> : vector<8x64xf32>
    %39 = tpu.matmul %38, %26, %cst_15 {dimension_numbers = #tpu.dot_dimension_numbers<[1], [0], [0], [1], [0, 0, 1, 1], [], []>} : vector<8x8xf32>, vector<8x64xf32>, vector<8x64xf32> -> vector<8x64xf32>
    %c0_16 = arith.constant 0 : index
    %c0_17 = arith.constant 0 : index
    %40 = vector.load %arg21[%c0_16, %c0_17] : memref<16x128xf32, #tpu.memory_space<vmem>>, vector<8x64xf32>
    tpu.vector_store %arg21[%c0_16, %c0_17], %39 {strides = array<i32>} : memref<16x128xf32, #tpu.memory_space<vmem>>, vector<8x64xf32>,
    %41 = vector.extract_strided_slice %21 {offsets = [0, 64], sizes = [8, 64], strides = [1, 1]} : vector<8x128xf32> to vector<8x64xf32>
    %42 = vector.extract_strided_slice %22 {offsets = [0, 64], sizes = [8, 64], strides = [1, 1]} : vector<8x128xf32> to vector<8x64xf32>
    %43 = vector.extract_strided_slice %23 {offsets = [0, 64], sizes = [8, 64], strides = [1, 1]} : vector<8x128xf32> to vector<8x64xf32>
    %cst_18 = arith.constant dense<0.000000e+00> : vector<8x8xf32>
    %44 = tpu.matmul %41, %42, %cst_18 {dimension_numbers = #tpu.dot_dimension_numbers<[1], [1], [0], [0], [0, 0, 1, 0], [], []>} : vector<8x64xf32>, vector<8x64xf32>, vector<8x8xf32> -> vector<8x8xf32>
    %45 = arith.addf %44, %20 : vector<8x8xf32>
    %cst_19 = arith.constant dense<0xFF800000> : vector<8xf32>
    %46 = vector.multi_reduction <maximumf>, %45, %cst_19 [1] : vector<8x8xf32> to vector<8xf32>
    %47 = vector.shape_cast %46 : vector<8xf32> to vector<8x1xf32>
    %48 = vector.broadcast %47 : vector<8x1xf32> to vector<8x8xf32>
    %49 = arith.subf %45, %48 : vector<8x8xf32>
    %50 = math.exp %49 : vector<8x8xf32>
    %cst_20 = arith.constant dense<0.000000e+00> : vector<8xf32>
    %51 = vector.multi_reduction <add>, %50, %cst_20 [1] : vector<8x8xf32> to vector<8xf32>
    %52 = vector.shape_cast %51 : vector<8xf32> to vector<8x1xf32>
    %53 = tpu.reciprocal %52 {approx = true} : vector<8x1xf32> -> vector<8x1xf32>
    %54 = vector.broadcast %53 : vector<8x1xf32> to vector<8x8xf32>
    %55 = arith.mulf %50, %54 : vector<8x8xf32>
    %cst_21 = arith.constant dense<0.000000e+00> : vector<8x64xf32>
    %56 = tpu.matmul %55, %43, %cst_21 {dimension_numbers = #tpu.dot_dimension_numbers<[1], [0], [0], [1], [0, 0, 1, 1], [], []>} : vector<8x8xf32>, vector<8x64xf32>, vector<8x64xf32> -> vector<8x64xf32>
    %c0_22 = arith.constant 0 : index
    %c64 = arith.constant 64 : index
    %57 = vector.load %arg21[%c0_22, %c64] : memref<16x128xf32, #tpu.memory_space<vmem>>, vector<8x64xf32>
    tpu.vector_store %arg21[%c0_22, %c64], %56 {strides = array<i32>} : memref<16x128xf32, #tpu.memory_space<vmem>>, vector<8x64xf32>,
    %c1 = arith.constant 1 : index
    %c0_23 = arith.constant 0 : index
    %c0_24 = arith.constant 0 : index
    %58 = vector.load %arg2[%c1, %c0_23, %c0_24] : memref<2x1x8xf32, #tpu.memory_space<vmem>>, vector<1x1x8xf32>
    %59 = vector.shape_cast %58 : vector<1x1x8xf32> to vector<1x8xf32>
    %60 = vector.shape_cast %59 : vector<1x8xf32> to vector<1x8xf32>
    %61 = vector.broadcast %60 : vector<1x8xf32> to vector<8x8xf32>
    %62 = vector.extract_strided_slice %14 {offsets = [8, 0], sizes = [8, 128], strides = [1, 1]} : vector<16x128xf32> to vector<8x128xf32>
    %63 = vector.extract_strided_slice %15 {offsets = [8, 0], sizes = [8, 128], strides = [1, 1]} : vector<16x128xf32> to vector<8x128xf32>
    %64 = vector.extract_strided_slice %16 {offsets = [8, 0], sizes = [8, 128], strides = [1, 1]} : vector<16x128xf32> to vector<8x128xf32>
    %65 = vector.extract_strided_slice %62 {offsets = [0, 0], sizes = [8, 64], strides = [1, 1]} : vector<8x128xf32> to vector<8x64xf32>
    %66 = vector.extract_strided_slice %63 {offsets = [0, 0], sizes = [8, 64], strides = [1, 1]} : vector<8x128xf32> to vector<8x64xf32>
    %67 = vector.extract_strided_slice %64 {offsets = [0, 0], sizes = [8, 64], strides = [1, 1]} : vector<8x128xf32> to vector<8x64xf32>
    %cst_25 = arith.constant dense<0.000000e+00> : vector<8x8xf32>
    %68 = tpu.matmul %65, %66, %cst_25 {dimension_numbers = #tpu.dot_dimension_numbers<[1], [1], [0], [0], [0, 0, 1, 0], [], []>} : vector<8x64xf32>, vector<8x64xf32>, vector<8x8xf32> -> vector<8x8xf32>
    %69 = arith.addf %68, %61 : vector<8x8xf32>
    %cst_26 = arith.constant dense<0xFF800000> : vector<8xf32>
    %70 = vector.multi_reduction <maximumf>, %69, %cst_26 [1] : vector<8x8xf32> to vector<8xf32>
    %71 = vector.shape_cast %70 : vector<8xf32> to vector<8x1xf32>
    %72 = vector.broadcast %71 : vector<8x1xf32> to vector<8x8xf32>
    %73 = arith.subf %69, %72 : vector<8x8xf32>
    %74 = math.exp %73 : vector<8x8xf32>
    %cst_27 = arith.constant dense<0.000000e+00> : vector<8xf32>
    %75 = vector.multi_reduction <add>, %74, %cst_27 [1] : vector<8x8xf32> to vector<8xf32>
    %76 = vector.shape_cast %75 : vector<8xf32> to vector<8x1xf32>
    %77 = tpu.reciprocal %76 {approx = true} : vector<8x1xf32> -> vector<8x1xf32>
    %78 = vector.broadcast %77 : vector<8x1xf32> to vector<8x8xf32>
    %79 = arith.mulf %74, %78 : vector<8x8xf32>
    %cst_28 = arith.constant dense<0.000000e+00> : vector<8x64xf32>
    %80 = tpu.matmul %79, %67, %cst_28 {dimension_numbers = #tpu.dot_dimension_numbers<[1], [0], [0], [1], [0, 0, 1, 1], [], []>} : vector<8x8xf32>, vector<8x64xf32>, vector<8x64xf32> -> vector<8x64xf32>
    %c8 = arith.constant 8 : index
    %c0_29 = arith.constant 0 : index
    %81 = vector.load %arg21[%c8, %c0_29] : memref<16x128xf32, #tpu.memory_space<vmem>>, vector<8x64xf32>
    tpu.vector_store %arg21[%c8, %c0_29], %80 {strides = array<i32>} : memref<16x128xf32, #tpu.memory_space<vmem>>, vector<8x64xf32>,
    %82 = vector.extract_strided_slice %62 {offsets = [0, 64], sizes = [8, 64], strides = [1, 1]} : vector<8x128xf32> to vector<8x64xf32>
    %83 = vector.extract_strided_slice %63 {offsets = [0, 64], sizes = [8, 64], strides = [1, 1]} : vector<8x128xf32> to vector<8x64xf32>
    %84 = vector.extract_strided_slice %64 {offsets = [0, 64], sizes = [8, 64], strides = [1, 1]} : vector<8x128xf32> to vector<8x64xf32>
    %cst_30 = arith.constant dense<0.000000e+00> : vector<8x8xf32>
    %85 = tpu.matmul %82, %83, %cst_30 {dimension_numbers = #tpu.dot_dimension_numbers<[1], [1], [0], [0], [0, 0, 1, 0], [], []>} : vector<8x64xf32>, vector<8x64xf32>, vector<8x8xf32> -> vector<8x8xf32>
    %86 = arith.addf %85, %61 : vector<8x8xf32>
    %cst_31 = arith.constant dense<0xFF800000> : vector<8xf32>
    %87 = vector.multi_reduction <maximumf>, %86, %cst_31 [1] : vector<8x8xf32> to vector<8xf32>
    %88 = vector.shape_cast %87 : vector<8xf32> to vector<8x1xf32>
    %89 = vector.broadcast %88 : vector<8x1xf32> to vector<8x8xf32>
    %90 = arith.subf %86, %89 : vector<8x8xf32>
    %91 = math.exp %90 : vector<8x8xf32>
    %cst_32 = arith.constant dense<0.000000e+00> : vector<8xf32>
    %92 = vector.multi_reduction <add>, %91, %cst_32 [1] : vector<8x8xf32> to vector<8xf32>
    %93 = vector.shape_cast %92 : vector<8xf32> to vector<8x1xf32>
    %94 = tpu.reciprocal %93 {approx = true} : vector<8x1xf32> -> vector<8x1xf32>
    %95 = vector.broadcast %94 : vector<8x1xf32> to vector<8x8xf32>
    %96 = arith.mulf %91, %95 : vector<8x8xf32>
    %cst_33 = arith.constant dense<0.000000e+00> : vector<8x64xf32>
    %97 = tpu.matmul %96, %84, %cst_33 {dimension_numbers = #tpu.dot_dimension_numbers<[1], [0], [0], [1], [0, 0, 1, 1], [], []>} : vector<8x8xf32>, vector<8x64xf32>, vector<8x64xf32> -> vector<8x64xf32>
    %c8_34 = arith.constant 8 : index
    %c64_35 = arith.constant 64 : index
    %98 = vector.load %arg21[%c8_34, %c64_35] : memref<16x128xf32, #tpu.memory_space<vmem>>, vector<8x64xf32>
    tpu.vector_store %arg21[%c8_34, %c64_35], %97 {strides = array<i32>} : memref<16x128xf32, #tpu.memory_space<vmem>>, vector<8x64xf32>,
    %c0_36 = arith.constant 0 : index
    %c0_37 = arith.constant 0 : index
    %99 = vector.load %arg21[%c0_36, %c0_37] : memref<16x128xf32, #tpu.memory_space<vmem>>, vector<16x128xf32>
    %100 = arith.truncf %99 : vector<16x128xf32> to vector<16x128xbf16>
    %c0_38 = arith.constant 0 : index
    %c0_39 = arith.constant 0 : index
    %c0_40 = arith.constant 0 : index
    %101 = vector.load %arg5[%c0_38, %c0_39, %c0_40] : memref<1x128x128xbf16, #tpu.memory_space<vmem>>, vector<1x128x128xbf16>
    %102 = vector.shape_cast %101 : vector<1x128x128xbf16> to vector<128x128xbf16>
    %cst_41 = arith.constant dense<0.000000e+00> : vector<16x128xf32>
    %103 = tpu.matmul %100, %102, %cst_41 {dimension_numbers = #tpu.dot_dimension_numbers<[1], [0], [0], [1], [0, 0, 1, 1], [], []>} : vector<16x128xbf16>, vector<128x128xbf16>, vector<16x128xf32> -> vector<16x128xf32>
    %c0_42 = arith.constant 0 : index
    %c0_43 = arith.constant 0 : index
    %c0_44 = arith.constant 0 : index
    %104 = vector.load %arg6[%c0_42, %c0_43, %c0_44] : memref<1x1x128xf32, #tpu.memory_space<vmem>>, vector<1x1x128xf32>
    %105 = vector.shape_cast %104 : vector<1x1x128xf32> to vector<1x128xf32>
    %106 = vector.broadcast %105 : vector<1x128xf32> to vector<16x128xf32>
    %107 = arith.addf %103, %106 : vector<16x128xf32>
    %108 = arith.addf %3, %107 : vector<16x128xf32>
    %c0_45 = arith.constant 0 : index
    %c0_46 = arith.constant 0 : index
    %c0_47 = arith.constant 0 : index
    %109 = vector.load %arg7[%c0_45, %c0_46, %c0_47] : memref<1x1x128xf32, #tpu.memory_space<vmem>>, vector<1x1x128xf32>
    %110 = vector.shape_cast %109 : vector<1x1x128xf32> to vector<1x128xf32>
    %c0_48 = arith.constant 0 : index
    %c0_49 = arith.constant 0 : index
    %c0_50 = arith.constant 0 : index
    %111 = vector.load %arg8[%c0_48, %c0_49, %c0_50] : memref<1x1x128xf32, #tpu.memory_space<vmem>>, vector<1x1x128xf32>
    %112 = vector.shape_cast %111 : vector<1x1x128xf32> to vector<1x128xf32>
    %cst_51 = arith.constant dense<0.000000e+00> : vector<16xf32>
    %113 = vector.multi_reduction <add>, %108, %cst_51 [1] : vector<16x128xf32> to vector<16xf32>
    %114 = vector.shape_cast %113 : vector<16xf32> to vector<16x1xf32>
    %cst_52 = arith.constant 1.280000e+02 : f32
    %115 = vector.broadcast %cst_52 : f32 to vector<16x1xf32>
    %116 = arith.divf %114, %115 : vector<16x1xf32>
    %117 = vector.broadcast %116 : vector<16x1xf32> to vector<16x128xf32>
    %118 = arith.subf %108, %117 : vector<16x128xf32>
    %119 = arith.mulf %118, %118 : vector<16x128xf32>
    %cst_53 = arith.constant dense<0.000000e+00> : vector<16xf32>
    %120 = vector.multi_reduction <add>, %119, %cst_53 [1] : vector<16x128xf32> to vector<16xf32>
    %121 = vector.shape_cast %120 : vector<16xf32> to vector<16x1xf32>
    %cst_54 = arith.constant 1.280000e+02 : f32
    %122 = vector.broadcast %cst_54 : f32 to vector<16x1xf32>
    %123 = arith.divf %121, %122 : vector<16x1xf32>
    %124 = vector.broadcast %116 : vector<16x1xf32> to vector<16x128xf32>
    %125 = arith.subf %108, %124 : vector<16x128xf32>
    %cst_55 = arith.constant 9.99999996E-13 : f32
    %126 = vector.broadcast %cst_55 : f32 to vector<16x1xf32>
    %127 = arith.addf %123, %126 : vector<16x1xf32>
    %128 = math.rsqrt %127 : vector<16x1xf32>
    %129 = vector.broadcast %128 : vector<16x1xf32> to vector<16x128xf32>
    %130 = arith.mulf %125, %129 : vector<16x128xf32>
    %131 = vector.broadcast %110 : vector<1x128xf32> to vector<16x128xf32>
    %132 = arith.mulf %130, %131 : vector<16x128xf32>
    %133 = vector.broadcast %112 : vector<1x128xf32> to vector<16x128xf32>
    %134 = arith.addf %132, %133 : vector<16x128xf32>
    %135 = arith.truncf %134 : vector<16x128xf32> to vector<16x128xbf16>
    %c0_56 = arith.constant 0 : index
    %c0_57 = arith.constant 0 : index
    %c0_58 = arith.constant 0 : index
    %136 = vector.load %arg9[%c0_56, %c0_57, %c0_58] : memref<1x128x512xbf16, #tpu.memory_space<vmem>>, vector<1x128x512xbf16>
    %137 = vector.shape_cast %136 : vector<1x128x512xbf16> to vector<128x512xbf16>
    %cst_59 = arith.constant dense<0.000000e+00> : vector<16x512xf32>
    %138 = tpu.matmul %135, %137, %cst_59 {dimension_numbers = #tpu.dot_dimension_numbers<[1], [0], [0], [1], [0, 0, 1, 1], [], []>} : vector<16x128xbf16>, vector<128x512xbf16>, vector<16x512xf32> -> vector<16x512xf32>
    %c0_60 = arith.constant 0 : index
    %c0_61 = arith.constant 0 : index
    %c0_62 = arith.constant 0 : index
    %139 = vector.load %arg10[%c0_60, %c0_61, %c0_62] : memref<1x1x512xf32, #tpu.memory_space<vmem>>, vector<1x1x512xf32>
    %140 = vector.shape_cast %139 : vector<1x1x512xf32> to vector<1x512xf32>
    %141 = vector.broadcast %140 : vector<1x512xf32> to vector<16x512xf32>
    %142 = arith.addf %138, %141 : vector<16x512xf32>
    %cst_63 = arith.constant 5.000000e-01 : f32
    %143 = vector.broadcast %cst_63 : f32 to vector<16x512xf32>
    %144 = arith.mulf %143, %142 : vector<16x512xf32>
    %cst_64 = arith.constant 4.471500e-02 : f32
    %145 = vector.broadcast %cst_64 : f32 to vector<16x512xf32>
    %146 = arith.mulf %145, %142 : vector<16x512xf32>
    %147 = arith.mulf %146, %142 : vector<16x512xf32>
    %148 = arith.mulf %147, %142 : vector<16x512xf32>
    %149 = arith.addf %142, %148 : vector<16x512xf32>
    %cst_65 = arith.constant 0.797884583 : f32
    %150 = vector.broadcast %cst_65 : f32 to vector<16x512xf32>
    %151 = arith.mulf %150, %149 : vector<16x512xf32>
    %152 = math.tanh %151 : vector<16x512xf32>
    %cst_66 = arith.constant 1.000000e+00 : f32
    %153 = vector.broadcast %cst_66 : f32 to vector<16x512xf32>
    %154 = arith.addf %153, %152 : vector<16x512xf32>
    %155 = arith.mulf %144, %154 : vector<16x512xf32>
    %156 = arith.truncf %155 : vector<16x512xf32> to vector<16x512xbf16>
    %c0_67 = arith.constant 0 : index
    %c0_68 = arith.constant 0 : index
    %c0_69 = arith.constant 0 : index
    %157 = vector.load %arg11[%c0_67, %c0_68, %c0_69] : memref<1x512x128xbf16, #tpu.memory_space<vmem>>, vector<1x512x128xbf16>
    %158 = vector.shape_cast %157 : vector<1x512x128xbf16> to vector<512x128xbf16>
    %cst_70 = arith.constant dense<0.000000e+00> : vector<16x128xf32>
    %159 = tpu.matmul %156, %158, %cst_70 {dimension_numbers = #tpu.dot_dimension_numbers<[1], [0], [0], [1], [0, 0, 1, 1], [], []>} : vector<16x512xbf16>, vector<512x128xbf16>, vector<16x128xf32> -> vector<16x128xf32>
    %c0_71 = arith.constant 0 : index
    %c0_72 = arith.constant 0 : index
    %c0_73 = arith.constant 0 : index
    %160 = vector.load %arg12[%c0_71, %c0_72, %c0_73] : memref<1x1x128xf32, #tpu.memory_space<vmem>>, vector<1x1x128xf32>
    %161 = vector.shape_cast %160 : vector<1x1x128xf32> to vector<1x128xf32>
    %162 = vector.broadcast %161 : vector<1x128xf32> to vector<16x128xf32>
    %163 = arith.addf %159, %162 : vector<16x128xf32>
    %164 = arith.addf %134, %163 : vector<16x128xf32>
    %c0_74 = arith.constant 0 : index
    %c0_75 = arith.constant 0 : index
    %c0_76 = arith.constant 0 : index
    %165 = vector.load %arg13[%c0_74, %c0_75, %c0_76] : memref<1x1x128xf32, #tpu.memory_space<vmem>>, vector<1x1x128xf32>
    %166 = vector.shape_cast %165 : vector<1x1x128xf32> to vector<1x128xf32>
    %c0_77 = arith.constant 0 : index
    %c0_78 = arith.constant 0 : index
    %c0_79 = arith.constant 0 : index
    %167 = vector.load %arg14[%c0_77, %c0_78, %c0_79] : memref<1x1x128xf32, #tpu.memory_space<vmem>>, vector<1x1x128xf32>
    %168 = vector.shape_cast %167 : vector<1x1x128xf32> to vector<1x128xf32>
    %cst_80 = arith.constant dense<0.000000e+00> : vector<16xf32>
    %169 = vector.multi_reduction <add>, %164, %cst_80 [1] : vector<16x128xf32> to vector<16xf32>
    %170 = vector.shape_cast %169 : vector<16xf32> to vector<16x1xf32>
    %cst_81 = arith.constant 1.280000e+02 : f32
    %171 = vector.broadcast %cst_81 : f32 to vector<16x1xf32>
    %172 = arith.divf %170, %171 : vector<16x1xf32>
    %173 = vector.broadcast %172 : vector<16x1xf32> to vector<16x128xf32>
    %174 = arith.subf %164, %173 : vector<16x128xf32>
    %175 = arith.mulf %174, %174 : vector<16x128xf32>
    %cst_82 = arith.constant dense<0.000000e+00> : vector<16xf32>
    %176 = vector.multi_reduction <add>, %175, %cst_82 [1] : vector<16x128xf32> to vector<16xf32>
    %177 = vector.shape_cast %176 : vector<16xf32> to vector<16x1xf32>
    %cst_83 = arith.constant 1.280000e+02 : f32
    %178 = vector.broadcast %cst_83 : f32 to vector<16x1xf32>
    %179 = arith.divf %177, %178 : vector<16x1xf32>
    %180 = vector.broadcast %172 : vector<16x1xf32> to vector<16x128xf32>
    %181 = arith.subf %164, %180 : vector<16x128xf32>
    %cst_84 = arith.constant 9.99999996E-13 : f32
    %182 = vector.broadcast %cst_84 : f32 to vector<16x1xf32>
    %183 = arith.addf %179, %182 : vector<16x1xf32>
    %184 = math.rsqrt %183 : vector<16x1xf32>
    %185 = vector.broadcast %184 : vector<16x1xf32> to vector<16x128xf32>
    %186 = arith.mulf %181, %185 : vector<16x128xf32>
    %187 = vector.broadcast %166 : vector<1x128xf32> to vector<16x128xf32>
    %188 = arith.mulf %186, %187 : vector<16x128xf32>
    %189 = vector.broadcast %168 : vector<1x128xf32> to vector<16x128xf32>
    %190 = arith.addf %188, %189 : vector<16x128xf32>
    %c0_85 = arith.constant 0 : index
    %c0_86 = arith.constant 0 : index
    %191 = vector.load %arg20[%c0_85, %c0_86] : memref<16x128xf32, #tpu.memory_space<vmem>>, vector<16x128xf32>
    tpu.vector_store %arg20[%c0_85, %c0_86], %190 {strides = array<i32>} : memref<16x128xf32, #tpu.memory_space<vmem>>, vector<16x128xf32>,
    %c1_i32 = arith.constant 1 : i32
    %192 = arith.cmpi eq, %arg0, %c1_i32 : i32
    %193 = arith.extui %192 : i1 to i32
    %c0_i32_87 = arith.constant 0 : i32
    %194 = arith.cmpi ne, %193, %c0_i32_87 : i32
    scf.if %194 {
      %195 = vector.extract_strided_slice %190 {offsets = [0, 0], sizes = [1, 128], strides = [1, 1]} : vector<16x128xf32> to vector<1x128xf32>
      %196 = vector.extract_strided_slice %190 {offsets = [8, 0], sizes = [1, 128], strides = [1, 1]} : vector<16x128xf32> to vector<1x128xf32>
      %197 = tpu.concatenate %195, %196 in 0 : vector<1x128xf32>, vector<1x128xf32> -> vector<2x128xf32>
      %198 = arith.truncf %197 : vector<2x128xf32> to vector<2x128xbf16>
      %c0_88 = arith.constant 0 : index
      %c0_89 = arith.constant 0 : index
      %199 = vector.load %arg15[%c0_88, %c0_89] : memref<128x128xbf16, #tpu.memory_space<vmem>>, vector<128x128xbf16>
      %cst_90 = arith.constant dense<0.000000e+00> : vector<2x128xf32>
      %200 = tpu.matmul %198, %199, %cst_90 {dimension_numbers = #tpu.dot_dimension_numbers<[1], [0], [0], [1], [0, 0, 1, 1], [], []>} : vector<2x128xbf16>, vector<128x128xbf16>, vector<2x128xf32> -> vector<2x128xf32>
      %c0_91 = arith.constant 0 : index
      %c0_92 = arith.constant 0 : index
      %201 = vector.load %arg16[%c0_91, %c0_92] : memref<1x128xf32, #tpu.memory_space<vmem>>, vector<1x128xf32>
      %202 = vector.broadcast %201 : vector<1x128xf32> to vector<2x128xf32>
      %203 = arith.addf %200, %202 : vector<2x128xf32>
      %204 = math.tanh %203 : vector<2x128xf32>
      %205 = arith.truncf %204 : vector<2x128xf32> to vector<2x128xbf16>
      %c0_93 = arith.constant 0 : index
      %c0_94 = arith.constant 0 : index
      %206 = vector.load %arg17[%c0_93, %c0_94] : memref<128x128xbf16, #tpu.memory_space<vmem>>, vector<128x128xbf16>
      %cst_95 = arith.constant dense<0.000000e+00> : vector<2x128xf32>
      %207 = tpu.matmul %205, %206, %cst_95 {dimension_numbers = #tpu.dot_dimension_numbers<[1], [0], [0], [1], [0, 0, 1, 1], [], []>} : vector<2x128xbf16>, vector<128x128xbf16>, vector<2x128xf32> -> vector<2x128xf32>
      %c0_96 = arith.constant 0 : index
      %c0_97 = arith.constant 0 : index
      %208 = vector.load %arg18[%c0_96, %c0_97] : memref<1x128xf32, #tpu.memory_space<vmem>>, vector<1x128xf32>
      %209 = vector.broadcast %208 : vector<1x128xf32> to vector<2x128xf32>
      %210 = arith.addf %207, %209 : vector<2x128xf32>
      %c0_98 = arith.constant 0 : index
      %c0_99 = arith.constant 0 : index
      %211 = vector.load %arg19[%c0_98, %c0_99] : memref<2x128xf32, #tpu.memory_space<vmem>>, vector<2x128xf32>
      tpu.vector_store %arg19[%c0_98, %c0_99], %210 {strides = array<i32>} : memref<2x128xf32, #tpu.memory_space<vmem>>, vector<2x128xf32>,
    } else {
    }
    return
  }
  func.func @transform_0(%arg0: i32) -> (i32, i32) {
    %c0_i32 = arith.constant 0 : i32
    %c0_i32_0 = arith.constant 0 : i32
    %c0_i32_1 = arith.constant 0 : i32
    return %c0_i32, %c0_i32_0 : i32, i32
  }
  func.func @transform_1(%arg0: i32) -> (i32, i32, i32) {
    %c0_i32 = arith.constant 0 : i32
    %c0_i32_0 = arith.constant 0 : i32
    %c0_i32_1 = arith.constant 0 : i32
    %c0_i32_2 = arith.constant 0 : i32
    return %c0_i32, %c0_i32_0, %c0_i32_1 : i32, i32, i32
  }
  func.func @transform_2(%arg0: i32) -> (i32, i32, i32) {
    %c0_i32 = arith.constant 0 : i32
    %c0_i32_0 = arith.constant 0 : i32
    %c0_i32_1 = arith.constant 0 : i32
    return %arg0, %c0_i32, %c0_i32_0 : i32, i32, i32
  }
  func.func @transform_3(%arg0: i32) -> (i32, i32, i32) {
    %c0_i32 = arith.constant 0 : i32
    %c0_i32_0 = arith.constant 0 : i32
    %c0_i32_1 = arith.constant 0 : i32
    return %arg0, %c0_i32, %c0_i32_0 : i32, i32, i32
  }
  func.func @transform_4(%arg0: i32) -> (i32, i32, i32) {
    %c0_i32 = arith.constant 0 : i32
    %c0_i32_0 = arith.constant 0 : i32
    %c0_i32_1 = arith.constant 0 : i32
    return %arg0, %c0_i32, %c0_i32_0 : i32, i32, i32
  }
  func.func @transform_5(%arg0: i32) -> (i32, i32, i32) {
    %c0_i32 = arith.constant 0 : i32
    %c0_i32_0 = arith.constant 0 : i32
    %c0_i32_1 = arith.constant 0 : i32
    return %arg0, %c0_i32, %c0_i32_0 : i32, i32, i32
  }
  func.func @transform_6(%arg0: i32) -> (i32, i32, i32) {
    %c0_i32 = arith.constant 0 : i32
    %c0_i32_0 = arith.constant 0 : i32
    %c0_i32_1 = arith.constant 0 : i32
    return %arg0, %c0_i32, %c0_i32_0 : i32, i32, i32
  }
  func.func @transform_7(%arg0: i32) -> (i32, i32, i32) {
    %c0_i32 = arith.constant 0 : i32
    %c0_i32_0 = arith.constant 0 : i32
    %c0_i32_1 = arith.constant 0 : i32
    return %arg0, %c0_i32, %c0_i32_0 : i32, i32, i32
  }
  func.func @transform_8(%arg0: i32) -> (i32, i32, i32) {
    %c0_i32 = arith.constant 0 : i32
    %c0_i32_0 = arith.constant 0 : i32
    %c0_i32_1 = arith.constant 0 : i32
    return %arg0, %c0_i32, %c0_i32_0 : i32, i32, i32
  }
  func.func @transform_9(%arg0: i32) -> (i32, i32, i32) {
    %c0_i32 = arith.constant 0 : i32
    %c0_i32_0 = arith.constant 0 : i32
    %c0_i32_1 = arith.constant 0 : i32
    return %arg0, %c0_i32, %c0_i32_0 : i32, i32, i32
  }
  func.func @transform_10(%arg0: i32) -> (i32, i32, i32) {
    %c0_i32 = arith.constant 0 : i32
    %c0_i32_0 = arith.constant 0 : i32
    %c0_i32_1 = arith.constant 0 : i32
    return %arg0, %c0_i32, %c0_i32_0 : i32, i32, i32
  }
  func.func @transform_11(%arg0: i32) -> (i32, i32, i32) {
    %c0_i32 = arith.constant 0 : i32
    %c0_i32_0 = arith.constant 0 : i32
    %c0_i32_1 = arith.constant 0 : i32
    return %arg0, %c0_i32, %c0_i32_0 : i32, i32, i32
  }
  func.func @transform_12(%arg0: i32) -> (i32, i32, i32) {
    %c0_i32 = arith.constant 0 : i32
    %c0_i32_0 = arith.constant 0 : i32
    %c0_i32_1 = arith.constant 0 : i32
    return %arg0, %c0_i32, %c0_i32_0 : i32, i32, i32
  }
  func.func @transform_13(%arg0: i32) -> (i32, i32, i32) {
    %c0_i32 = arith.constant 0 : i32
    %c0_i32_0 = arith.constant 0 : i32
    %c0_i32_1 = arith.constant 0 : i32
    return %arg0, %c0_i32, %c0_i32_0 : i32, i32, i32
  }
  func.func @transform_14(%arg0: i32) -> (i32, i32) {
    %c0_i32 = arith.constant 0 : i32
    %c0_i32_0 = arith.constant 0 : i32
    %c0_i32_1 = arith.constant 0 : i32
    return %c0_i32, %c0_i32_0 : i32, i32
  }
  func.func @transform_15(%arg0: i32) -> (i32, i32) {
    %c0_i32 = arith.constant 0 : i32
    %c0_i32_0 = arith.constant 0 : i32
    %c0_i32_1 = arith.constant 0 : i32
    return %c0_i32, %c0_i32_0 : i32, i32
  }
  func.func @transform_16(%arg0: i32) -> (i32, i32) {
    %c0_i32 = arith.constant 0 : i32
    %c0_i32_0 = arith.constant 0 : i32
    %c0_i32_1 = arith.constant 0 : i32
    return %c0_i32, %c0_i32_0 : i32, i32
  }
  func.func @transform_17(%arg0: i32) -> (i32, i32) {
    %c0_i32 = arith.constant 0 : i32
    %c0_i32_0 = arith.constant 0 : i32
    %c0_i32_1 = arith.constant 0 : i32
    return %c0_i32, %c0_i32_0 : i32, i32
  }
  func.func @transform_18(%arg0: i32) -> (i32, i32) {
    %c0_i32 = arith.constant 0 : i32
    %c0_i32_0 = arith.constant 0 : i32
    %c0_i32_1 = arith.constant 0 : i32
    return %c0_i32, %c0_i32_0 : i32, i32
  }
}

</mosaic_0001>

<bundles_post_ra>
// kernel: tpu_custom_call.1
= control target key start
LH: loop header
LB: loop body
LE: loop exit
PB: predicated region body
PF: predicated region fallthrough
CT: control target
= control target key end

     0   :  { %s5041_s0 = inlined_call_operand.hbm [shape: f32[16,128], index: 0, kind: input, shape index: {}]   ;;  %s5042_s1 = inlined_call_operand.hbm [shape: f32[2,1,8], index: 1, kind: input, shape index: {}]   ;;  %s5043_s2 = inlined_call_operand.hbm [shape: bf16[2,128,384], index: 2, kind: input, shape index: {}]   ;;  %s5044_s3 = inlined_call_operand.hbm [shape: f32[2,1,384], index: 3, kind: input, shape index: {}]   ;;  %s5045_s4 = inlined_call_operand.hbm [shape: bf16[2,128,128], index: 4, kind: input, shape index: {}]   ;;  %s5046_s5 = inlined_call_operand.vmem [shape: f32[2,1,128], index: 5, kind: input, shape index: {}]   ;;  %s5047_s6 = inlined_call_operand.vmem [shape: f32[2,1,128], index: 6, kind: input, shape index: {}]   ;;  %s5048_s7 = inlined_call_operand.vmem [shape: f32[2,1,128], index: 7, kind: input, shape index: {}]   ;;  %s5049_s8 = inlined_call_operand.hbm [shape: bf16[2,128,512], index: 8, kind: input, shape index: {}]   ;;  %s5050_s9 = inlined_call_operand.vmem [shape: f32[2,1,512], index: 9, kind: input, shape index: {}]   ;;  %s5051_s10 = inlined_call_operand.hbm [shape: bf16[2,512,128], index: 10, kind: input, shape index: {}]   ;;  %s5052_s11 = inlined_call_operand.vmem [shape: f32[2,1,128], index: 11, kind: input, shape index: {}]   ;;  %s5053_s12 = inlined_call_operand.vmem [shape: f32[2,1,128], index: 12, kind: input, shape index: {}]   ;;  %s5054_s13 = inlined_call_operand.vmem [shape: f32[2,1,128], index: 13, kind: input, shape index: {}]   ;;  %s5055_s14 = inlined_call_operand.hbm [shape: bf16[128,128], index: 14, kind: input, shape index: {}]   ;;  %s5056_s15 = inlined_call_operand.vmem [shape: f32[1,128], index: 15, kind: input, shape index: {}]   ;;  %s5057_s16 = inlined_call_operand.hbm [shape: bf16[128,128], index: 16, kind: input, shape index: {}]   ;;  %s5058_s17 = inlined_call_operand.vmem [shape: f32[1,128], index: 17, kind: input, shape index: {}]   ;;  %s5059_s18 = inlined_call_operand.hbm [shape: f32[2,128], index: 18, kind: output, shape index: {}]  }
   0x1   :  { %5074 = sst [smem:[#allocation28_spill]] %s5041_s0 }
   0x2   :  { %5075 = sst [smem:[#allocation29_spill]] %s5042_s1 }
   0x3   :  { %5076 = sst [smem:[#allocation30_spill]] %s5043_s2 }
   0x4   :  { %5077 = sst [smem:[#allocation31_spill]] %s5044_s3 }
   0x5   :  { %5078 = sst [smem:[#allocation32_spill]] %s5045_s4 }
   0x6   :  { %5079 = sst [smem:[#allocation33_spill]] %s5046_s5 }
   0x7   :  { %5080 = sst [smem:[#allocation34_spill]] %s5047_s6 }
   0x8   :  { %5081 = sst [smem:[#allocation35_spill]] %s5048_s7 }
   0x9   :  { %5082 = sst [smem:[#allocation36_spill]] %s5049_s8 }
   0xa   :  { %5083 = sst [smem:[#allocation37_spill]] %s5050_s9 }
   0xb   :  { %5084 = sst [smem:[#allocation38_spill]] %s5051_s10 }
   0xc   :  { %5085 = sst [smem:[#allocation39_spill]] %s5052_s11 }
   0xd   :  { %5086 = sst [smem:[#allocation40_spill]] %s5053_s12 }
   0xe   :  { %5087 = sst [smem:[#allocation41_spill]] %s5054_s13 }
   0xf   :  { %5088 = sst [smem:[#allocation42_spill]] %s5056_s15 }
  0x10   :  { %5089 = sst [smem:[#allocation43_spill]] %s5058_s17 }
  0x11   :  { %5090 = sst [smem:[#allocation44_spill]] %s5059_s18 }
  0x12   :  { %23 = vsyncpa [#allocation5], 0 }
  0x13   :  { %24 = vsyncpa [#allocation8], 0 }
  0x14   :  { %25 = vsyncpa [#allocation16], 0 }
  0x15   :  { %26 = vsyncpa [#allocation6], 0  ;;  %s4378_s27 = smov 0   ;;  %s4380_s28 = smov 0  }
  0x16   :  { %s4382_s29 = smov 0   ;;  %s4384_s30 = smov 0  }
  0x17 LB: > { %5091 = sst [smem:[#allocation24_spill]] %s4252_s29  ;;  %s4397_s0 = sadd.s32 4294967295, %s4256_s30   ;;  %s4256_s30 = sphi %s4384_s30, %s5143_s30   ;;  %s4252_s29 = sphi %s4382_s29, %s5145_s29   ;;  %s4248_s28 = sphi %s4380_s28, %s5147_s28   ;;  %s4244_s27 = sphi %s4378_s27, %s5146_s27  }
  0x18   : > { %s4400_s19 = sadd.s32 1, %s4256_s30   ;;  %s81_s20 = sadd.s32 1, %s4252_s29 }
  0x19   : > { %5092 = sst [smem:[#allocation25_spill]] %s4400_s19  ;;  %s78_s1 = ssub.s32 %s4256_s30, %s4400_s19 }
  0x1a   : > { %p79_p0 = scmp.eq.s32.totalorder %s78_s1, 0  ;;  %p88_p1 = scmp.ne.s32.totalorder %s4252_s29, %s4248_s28 }
  0x1b   : > { %p89_p2 = scmp.eq.s32.totalorder %s4256_s30, 0  ;;  %p94_p3 = scmp.ne.s32.totalorder %s4248_s28, %s4244_s27 }
  0x1c   : > { %s4410_s21 = scalar_select %p79_p0, %s4252_s29, %s81_s20  }
  0x1d   : > { %p4412_p4 = por %p89_p2, %p88_p1  ;;  %p5064_p5 = scmp.eq.s32.totalorder %s4397_s0, 0 }
  0x1e   : > { %5093 = sst [smem:[#allocation26_spill]] %s4410_s21  ;;  %p3243_p6 = scmp.ge.s32.totalorder %s4256_s30, 1 }
  0x1f   : > { %p496_p7 = scmp.lt.s32.totalorder %s4256_s30, 3  ;;  %p4421_p8 = por %p5064_p5, %p94_p3 }
  0x20   : > { %s4258_s24 = smov [#allocation4]   ;;  %p3697_p13 = scmp.lt.s32.totalorder %s4256_s30, 2 }
  0x21   : > { %s5095_s2 = scalar_select %p4421_p8, 1, 0 }
  0x22   : > { %p4426_p10 = pnand %p3243_p6, %p496_p7  ;;  %s508_s25 = sshll.u32 %s4258_s24, 4  ;;  %s509_s25 = int_to_ptr.vmem [resolvable:$true] %s508_s25 }
  0x23   : > { %5096 = sst [smem:[#allocation27_spill]] %s5095_s2  ;;  %s567_s27 = sand.u32 1, %s4256_s30  }
  0x24   : > { %s5097_s23 = scalar_select %p4426_p10, 1, 0 }
  0x25   : > { %p3664_p11 = pneg %p4426_p10  ;;  %s4441_s1 = sand.u32 1, %s4252_s29  }
  0x26   : > { %s3945_s20 = scalar_lea.vmem %s509_s25, 256  ;;  %p3953_p6 = scmp.lt.s32.totalorder %s509_s25, %s509_s25 }
  0x27   : > { %p4434_p12 = pnand %p3664_p11, %p5064_p5  ;;  %p3946_p1 = scmp.ne.s32.totalorder %s509_s25, %s3945_s20 }
  0x28   : > { %p3954_p7 = scmp.lt.s32.totalorder %s3945_s20, %s3945_s20 }
  0x29   : > { %s5098_s26 = scalar_select %p4434_p12, 1, 0 }
  0x2a   : > { %p5065_p0 = pneg %p4434_p12  ;;  %p3955_p11 = por %p3954_p7, %p3953_p6 }
  0x2c   : > { %p3948_p2 = pnand %p3946_p1, %p5065_p0 }
  0x2e   : > { %p3949_p3 = pneg %p3948_p2 }
  0x30   : > { %p3956_p9 = pnand %p3955_p11, %p3949_p3 }
  0x32   : > { %3959 = shalt.err (!%p3956_p9)
}
  0x33   : > { %s4259_s24 = smov 128   ;;  %s4260_s21 = smov 8  }
  0x34   : > { %s5099_s18 = sld [smem:[#allocation28_spill]]  ;;  %s3628_s17 = smul.u32 192, %s4441_s1 }
  0x35   : > { %p4458_p1 = pnand %p3697_p13, %p4412_p4  ;;  %s3629_s15 = smul.u32 3072, %s4256_s30 }
  0x36   : > { %s5101_s11 = sld [smem:[#allocation30_spill]]  ;;  %s571_s7 = scalar_lea.vmem [#allocation9], %s3628_s17 }
  0x37   : > { %s578_s29 = sshll.u32 %s571_s7, 4  ;;  %p4476_p9 = pneg %p4458_p1  ;;  %s4468_s29 = int_to_ptr.vmem [resolvable:$true] %s578_s29 }
  0x3a   : > { %3667 = dma.hbm_to_vmem [thread:$0]  (!%p4434_p12), %s5099_s18, 256, %s509_s25, [#allocation5], %s4259_s24, %s4259_s24, %s4260_s21  }
  0x3b   : > { %s4470_s18 = scalar_lea.sflag [#allocation5], %s567_s27 }
  0x3c   : > { %s4466_s9 = scalar_lea.hbm %s5101_s11, %s3629_s15  ;;  %s3965_s15 = scalar_lea.hbm %s5101_s11, 6144 }
  0x3d   : > { %s3960_s19 = scalar_lea.hbm %s4466_s9, 3072  ;;  %p3966_p3 = scmp.lt.s32.totalorder %s4466_s9, %s5101_s11 }
  0x3e   : > { %p3961_p4 = scmp.ne.s32.totalorder %s4466_s9, %s3960_s19  ;;  %p3967_p6 = scmp.lt.s32.totalorder %s3965_s15, %s3960_s19 }
  0x40   : > { %p3963_p13 = pnand %p4476_p9, %p3961_p4  ;;  %p3968_p7 = por %p3967_p6, %p3966_p3 }
  0x42   : > { %p3964_p2 = pneg %p3963_p13 }
  0x44   : > { %p3969_p11 = pnand %p3968_p7, %p3964_p2 }
  0x46   : > { %3972 = shalt.err (!%p3969_p11)
}
  0x47   : > { %s3973_s22 = scalar_lea.vmem %s4468_s29, 3072  ;;  %s4261_s25 = smov [#allocation9]  }
  0x48   : > { %p3974_p5 = scmp.ne.s32.totalorder %s4468_s29, %s3973_s22  ;;  %s3978_s27 = sshll.u32 %s4261_s25, 4  ;;  %s3979_s27 = int_to_ptr.vmem [resolvable:$false] %s3978_s27 }
  0x49   : > { %s3980_s24 = scalar_lea.vmem %s3979_s27, 6144  ;;  %p3981_p0 = scmp.lt.s32.totalorder %s4468_s29, %s3979_s27 }
  0x4a   : > { %p3976_p4 = pnand %p3974_p5, %p4476_p9  ;;  %p3982_p8 = scmp.lt.s32.totalorder %s3980_s24, %s3973_s22 }
  0x4c   : > { %p3977_p13 = pneg %p3976_p4  ;;  %p3983_p10 = por %p3982_p8, %p3981_p0 }
  0x4e   : > { %p3984_p12 = pnand %p3983_p10, %p3977_p13 }
  0x50   : > { %3987 = shalt.err (!%p3984_p12)
}
  0x51   : > { %s4262_s19 = smov 192   ;;  %s4263_s12 = smov 12  }
  0x52   : > { %3680 = dma.hbm_to_vmem [thread:$0]  (!%p4458_p1), %s4466_s9, 3072, %s4468_s29, %s4470_s18, %s4262_s19, %s4262_s19, %s4263_s12  }
  0x53   : > { %s3630_s13 = smul.u32 3, %s4441_s1  ;;  %s3251_s7 = sshll.u32 %s4441_s1, 6 }
  0x54   : > { %s3631_s15 = smul.u32 48, %s4256_s30  ;;  %s5103_s3 = sld [smem:[#allocation31_spill]] }
  0x55   : > { %s592_s27 = scalar_lea.vmem [#allocation10], %s3630_s13 }
  0x56   : > { %s600_s24 = sshll.u32 %s592_s27, 4  ;;  %s601_s24 = int_to_ptr.vmem [resolvable:$true] %s600_s24 }
  0x5a   : > { %s598_s25 = scalar_lea.hbm %s5103_s3, %s3631_s15  ;;  %s3993_s2 = scalar_lea.hbm %s5103_s3, 96 }
  0x5b   : > { %s3988_s11 = scalar_lea.hbm %s598_s25, 48  ;;  %p3994_p12 = scmp.lt.s32.totalorder %s598_s25, %s5103_s3 }
  0x5c   : > { %p3989_p5 = scmp.ne.s32.totalorder %s598_s25, %s3988_s11  ;;  %p3995_p0 = scmp.lt.s32.totalorder %s3993_s2, %s3988_s11 }
  0x5e   : > { %p3991_p8 = pnand %p3989_p5, %p4476_p9  ;;  %p3996_p2 = por %p3995_p0, %p3994_p12 }
  0x60   : > { %p3992_p10 = pneg %p3991_p8 }
  0x62   : > { %p3997_p3 = pnand %p3996_p2, %p3992_p10 }
  0x64   : > { %4000 = shalt.err (!%p3997_p3)
}
  0x65   : > { %s4001_s19 = scalar_lea.vmem %s601_s24, 48  ;;  %s4264_s12 = smov [#allocation10]  }
  0x66   : > { %p4002_p6 = scmp.ne.s32.totalorder %s601_s24, %s4001_s19  ;;  %s4006_s13 = sshll.u32 %s4264_s12, 4  ;;  %s4007_s13 = int_to_ptr.vmem [resolvable:$false] %s4006_s13 }
  0x67   : > { %s4008_s15 = scalar_lea.vmem %s4007_s13, 96  ;;  %p4009_p4 = scmp.lt.s32.totalorder %s601_s24, %s4007_s13 }
  0x68   : > { %p4004_p7 = pnand %p4002_p6, %p4476_p9  ;;  %p4010_p13 = scmp.lt.s32.totalorder %s4008_s15, %s4001_s19 }
  0x6a   : > { %p4005_p11 = pneg %p4004_p7  ;;  %p4011_p5 = por %p4010_p13, %p4009_p4 }
  0x6c   : > { %p4012_p8 = pnand %p4011_p5, %p4005_p11 }
  0x6e   : > { %4015 = shalt.err (!%p4012_p8)
}
  0x6f   : > { %3683 = dma.hbm_to_vmem [thread:$0]  (!%p4458_p1), %s598_s25, 48, %s601_s24, %s4470_s18  }
  0x70   : > { %s3409_s5 = sshll.u32 %s4256_s30, 10  ;;  %s611_s6 = scalar_lea.vmem [#allocation11], %s3251_s7 }
  0x71   : > { %s618_s11 = sshll.u32 %s611_s6, 4  ;;  %s5104_s4 = sld [smem:[#allocation32_spill]]  ;;  %s4526_s11 = int_to_ptr.vmem [resolvable:$true] %s618_s11 }
  0x77   : > { %s4524_s22 = scalar_lea.hbm %s5104_s4, %s3409_s5  ;;  %s4021_s7 = scalar_lea.hbm %s5104_s4, 2048 }
  0x78   : > { %s4016_s27 = scalar_lea.hbm %s4524_s22, 1024  ;;  %p4022_p2 = scmp.lt.s32.totalorder %s4524_s22, %s5104_s4 }
  0x79   : > { %p4017_p10 = scmp.ne.s32.totalorder %s4524_s22, %s4016_s27  ;;  %p4023_p3 = scmp.lt.s32.totalorder %s4021_s7, %s4016_s27 }
  0x7b   : > { %p4019_p12 = pnand %p4017_p10, %p4476_p9  ;;  %p4024_p6 = por %p4023_p3, %p4022_p2 }
  0x7d   : > { %p4020_p0 = pneg %p4019_p12 }
  0x7f   : > { %p4025_p7 = pnand %p4024_p6, %p4020_p0 }
  0x81   : > { %4028 = shalt.err (!%p4025_p7)
}
  0x82   : > { %s4029_s19 = scalar_lea.vmem %s4526_s11, 1024  ;;  %s4265_s12 = smov [#allocation11]  }
  0x83   : > { %p4030_p11 = scmp.ne.s32.totalorder %s4526_s11, %s4029_s19  ;;  %s4034_s13 = sshll.u32 %s4265_s12, 4  ;;  %s4035_s13 = int_to_ptr.vmem [resolvable:$false] %s4034_s13 }
  0x84   : > { %s4036_s15 = scalar_lea.vmem %s4035_s13, 2048  ;;  %p4037_p5 = scmp.lt.s32.totalorder %s4526_s11, %s4035_s13 }
  0x85   : > { %p4032_p4 = pnand %p4030_p11, %p4476_p9  ;;  %p4038_p8 = scmp.lt.s32.totalorder %s4036_s15, %s4029_s19 }
  0x87   : > { %p4033_p13 = pneg %p4032_p4  ;;  %p4039_p10 = por %p4038_p8, %p4037_p5 }
  0x89   : > { %p4040_p12 = pnand %p4039_p10, %p4033_p13 }
  0x8b   : > { %4043 = shalt.err (!%p4040_p12)
}
  0x8c   : > { %s4266_s5 = smov 64   ;;  %s4267_s6 = smov 4  }
  0x8d   : > { %3686 = dma.hbm_to_vmem [thread:$0]  (!%p4458_p1), %s4524_s22, 1024, %s4526_s11, %s4470_s18, %s4266_s5, %s4266_s5, %s4267_s6  }
  0x8e   : > { %s4268_s2 = smov [#allocation7]   ;;  %s3254_s27 = sshll.u32 %s4441_s1, 8 }
  0x8f   : > { %s521_s17 = sshll.u32 %s4268_s2, 4  ;;  %p5105_p2 = scmp.ne.s32.totalorder %s5098_s26, 0  ;;  %s522_s17 = int_to_ptr.vmem [resolvable:$true] %s521_s17 }
  0x90   : > { %s4055_s25 = scalar_lea.vmem %s522_s17, 32  ;;  %p4063_p11 = scmp.lt.s32.totalorder %s522_s17, %s522_s17 }
  0x91   : > { %p4056_p0 = scmp.ne.s32.totalorder %s522_s17, %s4055_s25  ;;  %p5106_p3 = pneg %p5105_p2 }
  0x92   : > { %p4064_p4 = scmp.lt.s32.totalorder %s4055_s25, %s4055_s25 }
  0x93   : > { %p4058_p6 = pnand %p4056_p0, %p5106_p3 }
  0x94   : > { %p4065_p13 = por %p4064_p4, %p4063_p11 }
  0x95   : > { %p4059_p7 = pneg %p4058_p6 }
  0x97   : > { %p4066_p5 = pnand %p4065_p13, %p4059_p7 }
  0x99   : > { %4069 = shalt.err (!%p4066_p5)
}
  0x9a   : > { %s4269_s24 = smov 16   ;;  %s4270_s11 = smov 1  }
  0x9b   : > { %s5107_s9 = sld [smem:[#allocation29_spill]]  ;;  %s3410_s29 = sshll.u32 %s4256_s30, 12 }
  0x9c   : > { %s5108_s8 = sld [smem:[#allocation36_spill]]  ;;  %s650_s15 = scalar_lea.vmem [#allocation12], %s3254_s27 }
  0x9d   : > { %s657_s2 = sshll.u32 %s650_s15, 4  ;;  %s4573_s2 = int_to_ptr.vmem [resolvable:$true] %s657_s2 }
  0xa1   : > { %3670 = dma.hbm_to_vmem [thread:$0]  (!%p5105_p2), %s5107_s9, 32, %s522_s17, [#allocation8], %s4269_s24, %s4269_s24, %s4270_s11  }
  0xa2   : > { %s4569_s13 = scalar_lea.hbm %s5108_s8, %s3410_s29  ;;  %s4075_s22 = scalar_lea.hbm %s5108_s8, 8192 }
  0xa3   : > { %s4070_s25 = scalar_lea.hbm %s4569_s13, 4096  ;;  %p4076_p0 = scmp.lt.s32.totalorder %s4569_s13, %s5108_s8 }
  0xa4   : > { %p4071_p8 = scmp.ne.s32.totalorder %s4569_s13, %s4070_s25  ;;  %p4077_p3 = scmp.lt.s32.totalorder %s4075_s22, %s4070_s25 }
  0xa6   : > { %p4073_p10 = pnand %p4071_p8, %p4476_p9  ;;  %p4078_p6 = por %p4077_p3, %p4076_p0 }
  0xa8   : > { %p4074_p12 = pneg %p4073_p10 }
  0xaa   : > { %p4079_p7 = pnand %p4078_p6, %p4074_p12 }
  0xac   : > { %4082 = shalt.err (!%p4079_p7)
}
  0xad   : > { %s4083_s19 = scalar_lea.vmem %s4573_s2, 4096  ;;  %s4271_s12 = smov [#allocation12]  }
  0xae   : > { %p4084_p11 = scmp.ne.s32.totalorder %s4573_s2, %s4083_s19  ;;  %s4088_s15 = sshll.u32 %s4271_s12, 4  ;;  %s4089_s15 = int_to_ptr.vmem [resolvable:$false] %s4088_s15 }
  0xaf   : > { %s4090_s17 = scalar_lea.vmem %s4089_s15, 8192  ;;  %p4091_p5 = scmp.lt.s32.totalorder %s4573_s2, %s4089_s15 }
  0xb0   : > { %p4086_p4 = pnand %p4084_p11, %p4476_p9  ;;  %p4092_p8 = scmp.lt.s32.totalorder %s4090_s17, %s4083_s19 }
  0xb2   : > { %p4087_p13 = pneg %p4086_p4  ;;  %p4093_p10 = por %p4092_p8, %p4091_p5 }
  0xb4   : > { %p4094_p2 = pnand %p4093_p10, %p4087_p13 }
  0xb6   : > { %4097 = shalt.err (!%p4094_p2)
}
  0xb7   : > { %s4272_s25 = smov 256   ;;  %s4273_s11 = smov [#allocation14]  }
  0xb8   : > { %3689 = dma.hbm_to_vmem [thread:$0]  (!%p4458_p1), %s4569_s13, 4096, %s4573_s2, %s4470_s18, %s4272_s25, %s4272_s25, %s4269_s24  }
  0xb9   : > { %s534_s22 = sshll.u32 %s4273_s11, 4  ;;  %s4274_s7 = smov [#allocation15]   ;;  %s535_s22 = int_to_ptr.vmem [resolvable:$true] %s534_s22 }
  0xba   : > { %s550_s9 = sshll.u32 %s4274_s7, 4  ;;  %s4109_s12 = scalar_lea.vmem %s535_s22, 1024  ;;  %s551_s9 = int_to_ptr.vmem [resolvable:$true] %s550_s9 }
  0xbb   : > { %p4110_p12 = scmp.ne.s32.totalorder %s535_s22, %s4109_s12  ;;  %p5109_p0 = scmp.ne.s32.totalorder %s5098_s26, 0 }
  0xbc   : > { %p4117_p7 = scmp.lt.s32.totalorder %s535_s22, %s535_s22  ;;  %p4118_p11 = scmp.lt.s32.totalorder %s4109_s12, %s4109_s12 }
  0xbd   : > { %p5110_p3 = pneg %p5109_p0 }
  0xbe   : > { %p4119_p4 = por %p4118_p11, %p4117_p7 }
  0xbf   : > { %p4112_p2 = pnand %p4110_p12, %p5110_p3 }
  0xc1   : > { %p4113_p6 = pneg %p4112_p2 }
  0xc3   : > { %p4120_p13 = pnand %p4119_p4, %p4113_p6 }
  0xc5   : > { %4123 = shalt.err (!%p4120_p13)
}
  0xc6   : > { %3673 = dma.hbm_to_vmem [thread:$0]  (!%p5109_p0), %s5055_s14, 1024, %s535_s22, [#allocation8], %s4266_s5, %s4266_s5, %s4267_s6  }
  0xc7   : > { %s4135_s2 = scalar_lea.vmem %s551_s9, 1024  ;;  %p5111_p8 = pmov %p5110_p3 }
  0xc8   : > { %p4136_p5 = scmp.ne.s32.totalorder %s551_s9, %s4135_s2  ;;  %p4143_p3 = scmp.lt.s32.totalorder %s551_s9, %s551_s9 }
  0xc9   : > { %p4144_p2 = scmp.lt.s32.totalorder %s4135_s2, %s4135_s2 }
  0xca   : > { %p4138_p10 = pnand %p4136_p5, %p5111_p8 }
  0xcb   : > { %p4145_p6 = por %p4144_p2, %p4143_p3 }
  0xcc   : > { %p4139_p12 = pneg %p4138_p10 }
  0xce   : > { %p4146_p7 = pnand %p4145_p6, %p4139_p12 }
  0xd0   : > { %4149 = shalt.err (!%p4146_p7)
}
  0xd1   : > { %3676 = dma.hbm_to_vmem [thread:$0]  (!%p5109_p0), %s5057_s16, 1024, %s551_s9, [#allocation16], %s4266_s5, %s4266_s5, %s4267_s6  }
  0xd2   : > { %s5112_s10 = sld [smem:[#allocation38_spill]]  ;;  %s678_s26 = scalar_lea.vmem [#allocation13], %s3254_s27 }
  0xd3   : > { %s685_s22 = sshll.u32 %s678_s26, 4  ;;  %s686_s22 = int_to_ptr.vmem [resolvable:$true] %s685_s22 }
  0xd8   : > { %s4624_s11 = scalar_lea.hbm %s5112_s10, %s3410_s29  ;;  %s4155_s30 = scalar_lea.hbm %s5112_s10, 8192 }
  0xd9   : > { %s4150_s7 = scalar_lea.hbm %s4624_s11, 4096  ;;  %p4156_p0 = scmp.lt.s32.totalorder %s4624_s11, %s5112_s10 }
  0xda   : > { %p4151_p11 = scmp.ne.s32.totalorder %s4624_s11, %s4150_s7  ;;  %p4157_p5 = scmp.lt.s32.totalorder %s4155_s30, %s4150_s7 }
  0xdc   : > { %p4153_p4 = pnand %p4151_p11, %p4476_p9  ;;  %p4158_p8 = por %p4157_p5, %p4156_p0 }
  0xde   : > { %p4154_p13 = pneg %p4153_p4 }
  0xe0   : > { %p4159_p10 = pnand %p4158_p8, %p4154_p13 }
  0xe2   : > { %4162 = shalt.err (!%p4159_p10)
}
  0xe3   : > { %s4163_s1 = scalar_lea.vmem %s686_s22, 4096  ;;  %s4275_s27 = smov [#allocation13]  }
  0xe4   : > { %p4164_p12 = scmp.ne.s32.totalorder %s686_s22, %s4163_s1  ;;  %s4168_s29 = sshll.u32 %s4275_s27, 4  ;;  %s4169_s29 = int_to_ptr.vmem [resolvable:$false] %s4168_s29 }
  0xe5   : > { %s4170_s2 = scalar_lea.vmem %s4169_s29, 8192  ;;  %p4171_p6 = scmp.lt.s32.totalorder %s686_s22, %s4169_s29 }
  0xe6   : > { %p4166_p3 = pnand %p4164_p12, %p4476_p9  ;;  %p4172_p7 = scmp.lt.s32.totalorder %s4170_s2, %s4163_s1 }
  0xe8   : > { %p4167_p2 = pneg %p4166_p3  ;;  %p4173_p11 = por %p4172_p7, %p4171_p6 }
  0xea   : > { %p4174_p4 = pnand %p4173_p11, %p4167_p2 }
  0xec   : > { %4177 = shalt.err (!%p4174_p4)
}
  0xed   : > { %3692 = dma.hbm_to_vmem [thread:$0]  (!%p4458_p1), %s4624_s11, 4096, %s686_s22, %s4470_s18, %s4266_s5, %s4266_s5, %s4267_s6  }
  0xee   : > { %p5113_p9 = scmp.ne.s32.totalorder %s5097_s23, 0 }
  0xef   : > { %p5114_p13 = scmp.eq.s32.totalorder (!%p5113_p9), %s4397_s0, 0 }
  0xf0   : > { %715 = sbr.rel (%p5113_p9) target bundleno = 4594 (0x11f2), region = 92 }
  0xf5   : > { %4219 = dma.done.wait (%p5114_p13), [#allocation5], 256   ;;  %p5115_p0 = pmov %p5114_p13 }
  0xf7   : > { %4221 = vsyncadd (%p5115_p0), [#allocation5], 4294967040  ;;  %p5116_p5 = pmov %p5115_p0 }
  0xf8   : > { %p5117_p8 = pmov %p5115_p0 }
  0xf9   : > { %4223 = dma.done.wait (%p5116_p5), [#allocation8], 32  }
  0xfa   : > { %4225 = vsyncadd (%p5117_p8), [#allocation8], 4294967264  ;;  %s5118_s20 = sld [smem:[#allocation27_spill]]  ;;  %s725_s21 = sand.u32 1, %s4397_s0  }
  0xfb   : > { %s727_s18 = sand.u32 1, %s4248_s28   ;;  %s726_s23 = scalar_lea.sflag [#allocation5], %s725_s21 }
  0xfc   : > { %s3632_s5 = smul.u32 192, %s727_s18 }
  0xfe   : > { %s4660_s6 = scalar_lea.vmem [#allocation9], %s3632_s5 }
 0x100   : > { %p5119_p1 = scmp.ne.s32.totalorder %s5118_s20, 0 }
 0x102   : > { %4227 = dma.done.wait (%p5119_p1), %s726_s23, 12336  }
 0x103   : > { %4229 = vsyncadd (%p5119_p1), %s726_s23, 4294954960  ;;  %s3633_s19 = smul.u32 3, %s727_s18  ;;  %s3263_s15 = sshll.u32 %s727_s18, 6 }
 0x104   : > { %s3264_s17 = sshll.u32 %s727_s18, 8  ;;  %s4668_s11 = scalar_lea.vmem [#allocation11], %s3263_s15 }
 0x105   : > { %s4666_s25 = scalar_lea.vmem [#allocation10], %s3633_s19  ;;  %s4670_s26 = scalar_lea.vmem [#allocation12], %s3264_s17 }
 0x106   : > { %s4672_s22 = scalar_lea.vmem [#allocation13], %s3264_s17  ;;  %p5120_p10 = pmov %p5115_p0 }
 0x107   : > { %p5121_p12 = pmov %p5115_p0 }
 0x108   : > { %4231 = dma.done.wait (%p5120_p10), [#allocation8], 1024  }
 0x109   : > { %4233 = vsyncadd (%p5121_p12), [#allocation8], 4294966272  ;;  %p5122_p3 = pmov %p5115_p0 }
 0x10a   : > { %p5123_p2 = pmov %p5115_p0 }
 0x10b   : > { %4235 = dma.done.wait (%p5122_p3), [#allocation16], 1024  }
 0x10c   : > { %4237 = vsyncadd (%p5123_p2), [#allocation16], 4294966272  ;;  %p863_p6 = scmp.lt.s32.totalorder %s4397_s0, 1  ;;  %s5126_s21 = sld [smem:[#allocation35_spill]] }
 0x10d   : > { %s5127_s15 = sld [smem:[#allocation37_spill]]  ;;  %p5131_p7 = scmp.ne.s32.totalorder %s4397_s0, 0 }
 0x10e   : > { %s4684_s7 = scalar_select %p863_p6, %s4397_s0, 1 }
 0x10f   : > { %s5128_s3 = sld [smem:[#allocation39_spill]] }
 0x110   : > { %s3268_s5 = sshll.u32 %s4684_s7, 2  ;;  %s5129_s24 = sld [smem:[#allocation40_spill]] }
 0x111   : > { %s5130_s27 = sld [smem:[#allocation41_spill]] }
 0x112   : > { %s871_s18 = scalar_lea.vmem %s5126_s21, %s4684_s7 }
 0x113   : > { %s4702_s17 = scalar_lea.vmem %s5127_s15, %s3268_s5  ;;  %889 = sbr.rel (%p5131_p7) target bundleno = 282 (0x11a), region = 132 }
 0x115   : > { %s878_s4 = scalar_lea.vmem %s5128_s3, %s4684_s7 }
 0x116   : > { %s881_s10 = scalar_lea.vmem %s5129_s24, %s4684_s7 }
 0x117   : > { %s884_s29 = scalar_lea.vmem %s5130_s27, %s4684_s7 }
 0x118   : > { %v890_v0 = vld [vmem:[#allocation4] sm:$0xff]  ;;  %v891_v1 = vld [vmem:[#allocation4 + $0x8] sm:$0xff] }
 0x119   : > { %892 = vst [vmem:[#allocation2] sm:$0xff] %v890_v0  ;;  %893 = vst [vmem:[#allocation2 + $0x8] sm:$0xff] %v891_v1 }
 0x11a PF: > { %v3756_v2 = vld [vmem:[%s4660_s6 + $0xac] ss:$12 sps:$4 sm:$0xff]   ;;  %v3758_v3 = vld [vmem:[%s4660_s6 + $0xa8] ss:$12 sps:$4 sm:$0xff]   ;;  %v4276_v4 = vmov 0   ;;  %v4277_v5 = vmov 0.0   ;;  %v931_v31 = vlaneseq }
 0x11b   : > { %1106 = vmatprep.mubr.bf16.mxu0 %v4276_v4  ;;  %3508 = vmatprep.subr.bf16.mxu1 %v4277_v5  ;;  %v3759_v6 = vld [vmem:[%s4660_s6 + $0x94] ss:$12 sps:$4 sm:$0xff]   ;;  %vm4278_vm0 = vmmov 0   ;;  %v3761_v7 = vld [vmem:[%s4660_s6 + $0x90] ss:$12 sps:$4 sm:$0xff]   ;;  %vm1167_vm1 = vcmask 523264  }
 0x11c   : > { %1074 = vmatprep.subr.bf16.mxu0 %v3756_v2  ;;  %3524 = vmatprep.mubr.msk.bf16.mxu1 %vm4278_vm0, %v4277_v5  ;;  %v3762_v8 = vld [vmem:[%s4660_s6 + $0x7c] ss:$12 sps:$4 sm:$0xff]   ;;  %v3764_v9 = vld [vmem:[%s4660_s6 + $0x78] ss:$12 sps:$4 sm:$0xff]   ;;  %v3767_v11 = vld [vmem:[%s4660_s6 + $0x60] ss:$12 sps:$4 sm:$0xff]  }
 0x11d   : > { %1075 = vmatpush1.bf16.msra.mxu0 %v3758_v3  ;;  %v3765_v10 = vld [vmem:[%s4660_s6 + $0x64] ss:$12 sps:$4 sm:$0xff]   ;;  %v3768_v12 = vld [vmem:[%s4660_s6 + $0x4c] ss:$12 sps:$4 sm:$0xff]   ;;  %v3770_v15 = vld [vmem:[%s4660_s6 + $0x48] ss:$12 sps:$4 sm:$0xff]  }
 0x11e   : > { %1076 = vmatprep.subr.bf16.mxu0 %v3759_v6  ;;  %v3780_v13 = vld [vmem:[%s4660_s6 + $0xb0] ss:$12 sps:$4 sm:$0xff]   ;;  %v3781_v14 = vld [vmem:[%s4660_s6 + $0x98] ss:$12 sps:$4 sm:$0xff]   ;;  %v3771_v16 = vld [vmem:[%s4660_s6 + $0x34] ss:$12 sps:$4 sm:$0xff]  }
 0x11f   : > { %3509 = vmatpush3.bf16.msra.mxu1 %v3780_v13  ;;  %v3782_v17 = vld [vmem:[%s4660_s6 + $0x80] ss:$12 sps:$4 sm:$0xff]   ;;  %v3773_v18 = vld [vmem:[%s4660_s6 + $0x30] ss:$12 sps:$4 sm:$0xff]   ;;  %v3783_v20 = vld [vmem:[%s4660_s6 + $0x68] ss:$12 sps:$4 sm:$0xff]  }
 0x120   : > { %3510 = vmatprep.subr.bf16.mxu1 %v4277_v5  ;;  %v3774_v19 = vld [vmem:[%s4660_s6 + $0x1c] ss:$12 sps:$4 sm:$0xff]   ;;  %v3776_v21 = vld [vmem:[%s4660_s6 + $0x18] ss:$12 sps:$4 sm:$0xff]   ;;  %v3779_v24 = vld [vmem:[%s4660_s6] ss:$12 sps:$4 sm:$0xff]  }
 0x121   : > { %1077 = vmatpush1.bf16.msra.mxu0 %v3761_v7  ;;  %v3777_v22 = vld [vmem:[%s4660_s6 + $0x4] ss:$12 sps:$4 sm:$0xff]   ;;  %v4748_v26 = vld [vmem:[#allocation2 + $0x8] sm:$0xff]  ;;  %v3786_v29 = vld [vmem:[%s4660_s6 + $0x20] ss:$12 sps:$4 sm:$0xff]   ;;  %v4765_v32 = vshrl.u32 %v931_v31, 7 }
 0x122   : > { %1078 = vmatprep.subr.bf16.mxu0 %v3762_v8  ;;  %v3784_v23 = vld [vmem:[%s4660_s6 + $0x50] ss:$12 sps:$4 sm:$0xff]   ;;  %v3785_v27 = vld [vmem:[%s4660_s6 + $0x38] ss:$12 sps:$4 sm:$0xff]   ;;  %v3787_v30 = vld [vmem:[%s4660_s6 + $0x8] ss:$12 sps:$4 sm:$0xff]  }
 0x123   : > { %3511 = vmatpush3.bf16.msra.mxu1 %v3781_v14  ;;  %v4746_v25 = vld [vmem:[#allocation2] sm:$0xff]  ;;  %v933_v33 = vsub.s32 0, %v4765_v32  ;;  %v929_v34 = vld [vmem:[%s4666_s25] sm:$0x7]  ;;  %v937_v35 = vsub.s32 1, %v4765_v32  ;;  %v941_v42 = vsub.s32 2, %v4765_v32 }
 0x124   : > { %3512 = vmatprep.subr.bf16.mxu1 %v4277_v5  ;;  %v896_v28 = vpack.c.bf16 %v4748_v26, %v4746_v25  ;;  %s4279_s3 = smov 64   ;;  %v3294_v51 = vld [vmem:[#allocation7] ss:$0 sm:$0xff]  ;;  %vm1244_vm2 = vcmask 64512   ;;  %vm1500_vm3 = vcmask 1048064   ;;  %s5132_s25 = sld [smem:[#allocation33_spill]] }
 0x125   : > { %1079 = vmatpush1.bf16.msra.mxu0 %v3764_v9  ;;  %v4772_v36 = vrot.slane %v929_v34, %v933_v33  ;;  %v4776_v37 = vrot.slane %v929_v34, %v937_v35  ;;  %v942_v44 = vrot.slane %v929_v34, %v941_v42  ;;  %s5134_s2 = sld [smem:[#allocation34_spill]]  ;;  %p3386_p11 = scmp.ne.s32.totalorder %s4397_s0, 1 }
 0x126   : > { %1080 = vmatprep.subr.bf16.mxu0 %v3765_v10  ;;  %s5141_s27 = sld [smem:[#allocation43_spill]] (!%p3386_p11) }
 0x127   : > { %3513 = vmatpush3.bf16.msra.mxu1 %v3782_v17 }
 0x128   : > { %3514 = vmatprep.subr.bf16.mxu1 %v4277_v5 }
 0x129   : > { %1081 = vmatpush1.bf16.msra.mxu0 %v3767_v11 }
 0x12a   : > { %1082 = vmatprep.subr.bf16.mxu0 %v3768_v12 }
 0x12b   : > { %3515 = vmatpush3.bf16.msra.mxu1 %v3783_v20  ;;  %s5135_s20 = scalar_lea.vmem %s5134_s2, %s4684_s7 }
 0x12c   : > { %3516 = vmatprep.subr.bf16.mxu1 %v4277_v5 }
 0x12d   : > { %1083 = vmatpush1.bf16.msra.mxu0 %v3770_v15 }
 0x12e   : > { %1084 = vmatprep.subr.bf16.mxu0 %v3771_v16 }
 0x12f   : > { %3517 = vmatpush3.bf16.msra.mxu1 %v3784_v23 }
 0x130   : > { %3518 = vmatprep.subr.bf16.mxu1 %v4277_v5 }
 0x131   : > { %1085 = vmatpush1.bf16.msra.mxu0 %v3773_v18 }
 0x132   : > { %1086 = vmatprep.subr.bf16.mxu0 %v3774_v19 }
 0x133   : > { %3519 = vmatpush3.bf16.msra.mxu1 %v3785_v27 }
 0x134   : > { %3520 = vmatprep.subr.bf16.mxu1 %v4277_v5 }
 0x135   : > { %1087 = vmatpush1.bf16.msra.mxu0 %v3776_v21 }
 0x136   : > { %1088 = vmatprep.subr.bf16.mxu0 %v3777_v22 }
 0x137   : > { %3521 = vmatpush3.bf16.msra.mxu1 %v3786_v29 }
 0x138   : > { %3522 = vmatprep.subr.bf16.mxu1 %v4277_v5 }
 0x139   : > { %1089 = vmatpush1.bf16.msra.mxu0 %v3779_v24 }
 0x13a   : > { %3568 = vmatprep.subr.bf16.mxu0 %v4277_v5 }
 0x13b   : > { %3523 = vmatpush3.bf16.msra.mxu1 %v3787_v30 }
 0x13c   : > { %1107 = vmatmul.mubr.bf16.vlgmr.msra.gmra.mxu0 %v896_v28  ;;  %3528 = vmatprep.subr.mxu1 %v4277_v5 }
 0x13d   : > { %3584 = vmatprep.mubr.msk.bf16.mxu0 %vm4278_vm0, %v4277_v5 }
 0x13e   : > { %3525 = vmatmul.mubr.bf16.vlgmr.msra.gmra.mxu1 %v896_v28  ;;  %v3301_v28 = vld [vmem:[#allocation7 + $0x1] ss:$0 sm:$0xff] }
 0x13f   : > { %3530 = vmatprep.mubr.msk.f32.mxu1 %vm4278_vm0, %v4277_v5 }
 0x1fc   : > { %v1108_v38 = vpop.f32.mrf.mxu0 }
 0x1fd   : > { %v1109_v39 = vadd.f32 %v1108_v38, %v4772_v36 }
 0x1fe   : > { %v1110_v40 = vpop.f32.mrf.mxu0  ;;  %v1151_v45 = vpop.f32.mrf.mxu1 }
 0x1ff   : > { %v1111_v41 = vadd.f32 %v1110_v40, %v4776_v37  ;;  %v1158_v43 = vmul.f32 0.125, %v1109_v39  ;;  %v1152_v46 = vadd.f32 %v1151_v45, %v942_v44 }
 0x200   : > { %v3526_v47 = vpop.f32.mrf.mxu1  ;;  %v1112_v17 = vpop.f32.mrf.mxu0 }
 0x201   : > { %1332 = vrot.lane.b32.xlu1 %v1111_v41, %s4279_s3  ;;  %3529 = vmatpush3.xpose.msk.msra.mxu1 %vm1167_vm1, %v1111_v41  ;;  %v1113_v20 = vadd.f32 %v1112_v17, %v4772_v36 }
 0x202   : > { %3533 = vmatprep.subr.mxu1 %v4277_v5  ;;  %v1154_v48 = vpop.f32.mrf.mxu1  ;;  %v1114_v18 = vpop.f32.mrf.mxu0 }
 0x203   : > { %v4791_v49 = vadd.f32 %v1154_v48, %v942_v44  ;;  %v1115_v22 = vadd.f32 %v1114_v18, %v4776_v37  ;;  %v1159_v23 = vmul.f32 0.125, %v1113_v20 }
 0x204   : > { %3531 = vmatmul.mubr.msk.f32.vlgmr.msra.gmra.mxu1 %vm1167_vm1, %v1158_v43  ;;  %v3527_v50 = vpop.f32.mrf.mxu1 }
 0x205   : > { %1330 = vrot.lane.b32.xlu1 %v1158_v43, %s4279_s3  ;;  %3535 = vmatprep.mubr.msk.f32.mxu1 %vm4278_vm0, %v4277_v5 }
 0x206   : > { %3534 = vmatpush3.msra.mxu1 %v1152_v46 }
 0x207   : > { %3538 = vmatprep.subr.mxu1 %v4277_v5 }
 0x273   : > { %v1333_v63 = vpop.permute.xlu1 %1332 }
 0x277   : > { %v1331_v1 = vpop.permute.xlu1 %1330 }
 0x2c4   : > { %v1240_v52 = vpop.f32.mrf.mxu1 }
 0x2c5   : > { %v1241_v53 = vadd.f32 %v3294_v51, %v1240_v52 }
 0x2c6   : > { %v3532_v54 = vpop.f32.mrf.mxu1 }
 0x2c7   : > { %v1245_v55 = vsel %vm1244_vm2, %v1241_v53, -inf }
 0x2c8   : > { %1246 = vmax.xlane.f32.xlu0 %v1245_v55 }
 0x351   : > { %v1247_v56 = vpop.xlane.xlu0 %1246 }
 0x352   : > { %v1248_v57 = vsub.f32 %v1241_v53, %v1247_v56 }
 0x354   : > { %v1249_v58 = vmul.f32 1.442695, %v1248_v57 }
 0x356   : > { %3876 = vpow2.f32 %v1249_v58 }
 0x363   : > { %v3877_v59 = vpop.eup %3876 }
 0x364   : > { %v1251_v60 = vsel %vm1244_vm2, %v3877_v59, 0.0 }
 0x365   : > { %1252 = vadd.xlane.f32.xlu0 %v1251_v60 }
 0x3ee   : > { %v1253_v61 = vpop.xlane.xlu0 %1252 }
 0x3ef   : > { %3878 = vrcp.f32 %v1253_v61 }
 0x3fc   : > { %v3879_v62 = vpop.eup %3878 }
 0x3fd   : > { %v1255_v0 = vmul.f32 %v3879_v62, %v3877_v59 }
 0x3ff   : > { %3536 = vmatmul.mubr.msk.f32.vlgmr.msra.gmra.mxu1 %vm1244_vm2, %v1255_v0  ;;  %v3789_v0 = vld [vmem:[%s4668_s11 + $0x30] sm:$0xff]  }
 0x400   : > { %3539 = vmatpush3.xpose.msk.msra.mxu1 %vm1167_vm1, %v1333_v63  ;;  %3540 = vmatprep.mubr.msk.f32.mxu1 %vm4278_vm0, %v4277_v5  ;;  %v3788_v63 = vld [vmem:[%s4668_s11 + $0x38] sm:$0xff]  }
 0x401   : > { %3543 = vmatprep.subr.mxu1 %v4277_v5  ;;  %3569 = vmatpush3.bf16.msra.mxu0 %v3788_v63  ;;  %v3843_v63 = vld [vmem:[%s4670_s26 + $0xc] ss:$16 sps:$4 sm:$0xff]  }
 0x402   : > { %3570 = vmatprep.subr.bf16.mxu0 %v4277_v5 }
 0x403   : > { %3541 = vmatmul.mubr.msk.f32.vlgmr.msra.gmra.mxu1 %vm1167_vm1, %v1331_v1  ;;  %v3790_v1 = vld [vmem:[%s4668_s11 + $0x28] sm:$0xff]  }
 0x404   : > { %3545 = vmatprep.mubr.msk.f32.mxu1 %vm4278_vm0, %v4277_v5 }
 0x405   : > { %3571 = vmatpush3.bf16.msra.mxu0 %v3789_v0  ;;  %v3838_v0 = vld [vmem:[%s4670_s26] ss:$16 sps:$4 sm:$0xff]  }
 0x406   : > { %3572 = vmatprep.subr.bf16.mxu0 %v4277_v5 }
 0x409   : > { %3573 = vmatpush3.bf16.msra.mxu0 %v3790_v1  ;;  %v3841_v1 = vld [vmem:[%s4670_s26 + $0x8] ss:$16 sps:$4 sm:$0xff]  }
 0x40a   : > { %3574 = vmatprep.subr.bf16.mxu0 %v4277_v5 }
 0x4bf   : > { %v1325_v2 = vpop.f32.mrf.mxu1 }
 0x4c0   : > { %1329 = vst.msk [vmem:[#allocation3] sm:$0xff] %vm1167_vm1, %v1325_v2  ;;  %v3791_v2 = vld [vmem:[%s4668_s11 + $0x20] sm:$0xff]  }
 0x4c1   : > { %v3537_v3 = vpop.f32.mrf.mxu1  ;;  %3575 = vmatpush3.bf16.msra.mxu0 %v3791_v2 }
 0x4c2   : > { %v3792_v3 = vld [vmem:[%s4668_s11 + $0x18] sm:$0xff]   ;;  %3576 = vmatprep.subr.bf16.mxu0 %v4277_v5 }
 0x4c3   : > { %v1404_v6 = vpop.f32.mrf.mxu1 }
 0x4c4   : > { %v1405_v7 = vadd.f32 %v3294_v51, %v1404_v6  ;;  %v3793_v6 = vld [vmem:[%s4668_s11 + $0x10] sm:$0xff]  }
 0x4c5   : > { %v3542_v8 = vpop.f32.mrf.mxu1  ;;  %3577 = vmatpush3.bf16.msra.mxu0 %v3792_v3 }
 0x4c6   : > { %v1408_v9 = vsel %vm1244_vm2, %v1405_v7, -inf  ;;  %3578 = vmatprep.subr.bf16.mxu0 %v4277_v5  ;;  %v3795_v8 = vld [vmem:[%s4668_s11] sm:$0xff]  }
 0x4c7   : > { %1409 = vmax.xlane.f32.xlu0 %v1408_v9 }
 0x4c9   : > { %3579 = vmatpush3.bf16.msra.mxu0 %v3793_v6 }
 0x4ca   : > { %3580 = vmatprep.subr.bf16.mxu0 %v4277_v5 }
 0x4dd   : > { %1420 = vrot.lane.b32.xlu0 %v1152_v46, %s4279_s3 }
 0x550   : > { %v1410_v10 = vpop.xlane.xlu0 %1409 }
 0x551   : > { %v1411_v11 = vsub.f32 %v1405_v7, %v1410_v10  ;;  %v3794_v7 = vld [vmem:[%s4668_s11 + $0x8] sm:$0xff]   ;;  %s5133_s11 = scalar_lea.vmem %s5132_s25, %s4684_s7 }
 0x552   : > { %3581 = vmatpush3.bf16.msra.mxu0 %v3794_v7 }
 0x553   : > { %v1412_v12 = vmul.f32 1.442695, %v1411_v11  ;;  %3582 = vmatprep.subr.bf16.mxu0 %v4277_v5 }
 0x554   : > { %v1421_v13 = vpop.permute.xlu0 %1420 }
 0x555   : > { %3880 = vpow2.f32 %v1412_v12  ;;  %3544 = vmatpush3.msra.mxu1 %v1421_v13 }
 0x556   : > { %3548 = vmatprep.subr.mxu1 %v4277_v5  ;;  %3583 = vmatpush3.bf16.msra.mxu0 %v3795_v8 }
 0x562   : > { %v3881_v14 = vpop.eup %3880 }
 0x563   : > { %v1414_v15 = vsel %vm1244_vm2, %v3881_v14, 0.0 }
 0x564   : > { %1415 = vadd.xlane.f32.xlu1 %v1414_v15 }
 0x5ed   : > { %v1416_v16 = vpop.xlane.xlu1 %1415 }
 0x5ee   : > { %3882 = vrcp.f32 %v1416_v16 }
 0x5fb   : > { %v3883_v19 = vpop.eup %3882 }
 0x5fc   : > { %v1418_v21 = vmul.f32 %v3883_v19, %v3881_v14 }
 0x5fe   : > { %3546 = vmatmul.mubr.msk.f32.vlgmr.msra.gmra.mxu1 %vm1244_vm2, %v1418_v21 }
 0x5ff   : > { %3549 = vmatpush3.xpose.msk.msra.mxu1 %vm1167_vm1, %v1115_v22  ;;  %3550 = vmatprep.mubr.msk.f32.mxu1 %vm4278_vm0, %v4277_v5 }
 0x600   : > { %3553 = vmatprep.subr.mxu1 %v4277_v5 }
 0x602   : > { %3551 = vmatmul.mubr.msk.f32.vlgmr.msra.gmra.mxu1 %vm1167_vm1, %v1159_v23 }
 0x603   : > { %3554 = vmatpush3.msra.mxu1 %v4791_v49  ;;  %3555 = vmatprep.mubr.msk.f32.mxu1 %vm4278_vm0, %v4277_v5 }
 0x604   : > { %3558 = vmatprep.subr.mxu1 %v4277_v5 }
 0x6be   : > { %v1492_v24 = vpop.f32.mrf.mxu1 }
 0x6c0   : > { %v3547_v27 = vpop.f32.mrf.mxu1 }
 0x6c1   : > { %v3801_v27 = vld [vmem:[%s4670_s26 + $0xec] ss:$16 sps:$4 sm:$0xff]  }
 0x6c2   : > { %v1582_v29 = vpop.f32.mrf.mxu1  ;;  %2258 = vmatprep.subr.bf16.mxu0 %v3801_v27  ;;  %v3850_v27 = vld [vmem:[%s4672_s22 + $0x30] sm:$0xff]  }
 0x6c3   : > { %v1583_v30 = vadd.f32 %v3301_v28, %v1582_v29 }
 0x6c4   : > { %v3552_v31 = vpop.f32.mrf.mxu1 }
 0x6c5   : > { %v1586_v34 = vsel %vm1244_vm2, %v1583_v30, -inf }
 0x6c6   : > { %1587 = vmax.xlane.f32.xlu0 %v1586_v34 }
 0x6dc   : > { %1671 = vrot.lane.b32.xlu0 %v1159_v23, %s4279_s3  ;;  %v3796_v23 = vld [vmem:[%s4670_s26 + $0xe0] ss:$16 sps:$4 sm:$0xff]  }
 0x74f   : > { %v1588_v36 = vpop.xlane.xlu0 %1587 }
 0x750   : > { %v1589_v37 = vsub.f32 %v1583_v30, %v1588_v36 }
 0x752   : > { %v1590_v38 = vmul.f32 1.442695, %v1589_v37  ;;  %v3804_v37 = vld [vmem:[%s4670_s26 + $0xc4] ss:$16 sps:$4 sm:$0xff]  }
 0x753   : > { %v1672_v46 = vpop.permute.xlu0 %1671 }
 0x754   : > { %3884 = vpow2.f32 %v1590_v38  ;;  %v3807_v38 = vld [vmem:[%s4670_s26 + $0xcc] ss:$16 sps:$4 sm:$0xff]  }
 0x761   : > { %v3885_v39 = vpop.eup %3884 }
 0x762   : > { %v1592_v40 = vsel %vm1244_vm2, %v3885_v39, 0.0 }
 0x763   : > { %1593 = vadd.xlane.f32.xlu1 %v1592_v40  ;;  %v3805_v40 = vld [vmem:[%s4670_s26 + $0xc8] ss:$16 sps:$4 sm:$0xff]  }
 0x774   : > { %1673 = vrot.lane.b32.xlu1 %v1115_v22, %s4279_s3 }
 0x7ec   : > { %v1594_v41 = vpop.xlane.xlu1 %1593 }
 0x7ed   : > { %3886 = vrcp.f32 %v1594_v41  ;;  %v3810_v41 = vld [vmem:[%s4670_s26 + $0xa4] ss:$16 sps:$4 sm:$0xff]  }
 0x7f0   : > { %v1674_v45 = vpop.permute.xlu1 %1673 }
 0x7fa   : > { %v3887_v43 = vpop.eup %3886 }
 0x7fb   : > { %v1596_v44 = vmul.f32 %v3887_v43, %v3885_v39  ;;  %v3802_v39 = vld [vmem:[%s4670_s26 + $0xc0] ss:$16 sps:$4 sm:$0xff]   ;;  %v3813_v43 = vld [vmem:[%s4670_s26 + $0xac] ss:$16 sps:$4 sm:$0xff]  }
 0x7fd   : > { %3556 = vmatmul.mubr.msk.f32.vlgmr.msra.gmra.mxu1 %vm1244_vm2, %v1596_v44  ;;  %v3808_v44 = vld [vmem:[%s4670_s26 + $0xa0] ss:$16 sps:$4 sm:$0xff]  }
 0x7fe   : > { %3559 = vmatpush3.xpose.msk.msra.mxu1 %vm1167_vm1, %v1674_v45  ;;  %3560 = vmatprep.mubr.msk.f32.mxu1 %vm4278_vm0, %v4277_v5  ;;  %v3811_v45 = vld [vmem:[%s4670_s26 + $0xa8] ss:$16 sps:$4 sm:$0xff]  }
 0x7ff   : > { %3563 = vmatprep.subr.mxu1 %v4277_v5 }
 0x801   : > { %3561 = vmatmul.mubr.msk.f32.vlgmr.msra.gmra.mxu1 %vm1167_vm1, %v1672_v46  ;;  %v3814_v46 = vld [vmem:[%s4670_s26 + $0x80] ss:$16 sps:$4 sm:$0xff]  }
 0x802   : > { %3565 = vmatprep.mubr.msk.f32.mxu1 %vm4278_vm0, %v4277_v5  ;;  %v3308_v5 = vld [vmem:[%s5133_s11] ss:$0 sm:$0xff] }
 0x8bd   : > { %v1666_v47 = vpop.f32.mrf.mxu1 }
 0x8be   : > { %1670 = vst.msk [vmem:[#allocation3 + $0x8] sm:$0xff] %vm1167_vm1, %v1666_v47  ;;  %v3816_v47 = vld [vmem:[%s4670_s26 + $0x84] ss:$16 sps:$4 sm:$0xff]  }
 0x8bf   : > { %v3557_v48 = vpop.f32.mrf.mxu1 }
 0x8c0   : > { %v3817_v48 = vld [vmem:[%s4670_s26 + $0x88] ss:$16 sps:$4 sm:$0xff]  }
 0x8c1   : > { %v1745_v50 = vpop.f32.mrf.mxu1 }
 0x8c2   : > { %v1746_v51 = vadd.f32 %v3301_v28, %v1745_v50  ;;  %v3819_v50 = vld [vmem:[%s4670_s26 + $0x8c] ss:$16 sps:$4 sm:$0xff]  }
 0x8c3   : > { %v3562_v52 = vpop.f32.mrf.mxu1 }
 0x8c4   : > { %v1749_v53 = vsel %vm1244_vm2, %v1746_v51, -inf  ;;  %v3825_v52 = vld [vmem:[%s4670_s26 + $0x6c] ss:$16 sps:$4 sm:$0xff]  }
 0x8c5   : > { %1750 = vmax.xlane.f32.xlu1 %v1749_v53  ;;  %v3820_v53 = vld [vmem:[%s4670_s26 + $0x60] ss:$16 sps:$4 sm:$0xff]  }
 0x8d6   : > { %1761 = vrot.lane.b32.xlu1 %v4791_v49, %s4279_s3 }
 0x94e   : > { %v1751_v54 = vpop.xlane.xlu1 %1750 }
 0x94f   : > { %v1752_v55 = vsub.f32 %v1746_v51, %v1751_v54  ;;  %v3822_v51 = vld [vmem:[%s4670_s26 + $0x64] ss:$16 sps:$4 sm:$0xff]   ;;  %v3823_v54 = vld [vmem:[%s4670_s26 + $0x68] ss:$16 sps:$4 sm:$0xff]  }
 0x951   : > { %v1753_v56 = vmul.f32 1.442695, %v1752_v55  ;;  %v3828_v55 = vld [vmem:[%s4670_s26 + $0x44] ss:$16 sps:$4 sm:$0xff]  }
 0x952   : > { %v1762_v57 = vpop.permute.xlu1 %1761 }
 0x953   : > { %3888 = vpow2.f32 %v1753_v56  ;;  %3564 = vmatpush3.msra.mxu1 %v1762_v57  ;;  %v3831_v56 = vld [vmem:[%s4670_s26 + $0x4c] ss:$16 sps:$4 sm:$0xff]   ;;  %v3826_v57 = vld [vmem:[%s4670_s26 + $0x40] ss:$16 sps:$4 sm:$0xff]  }
 0x960   : > { %v3889_v58 = vpop.eup %3888 }
 0x961   : > { %v1755_v59 = vsel %vm1244_vm2, %v3889_v58, 0.0 }
 0x962   : > { %1756 = vadd.xlane.f32.xlu0 %v1755_v59  ;;  %v3834_v59 = vld [vmem:[%s4670_s26 + $0x24] ss:$16 sps:$4 sm:$0xff]  }
 0x978   : > { %1497 = vrot.lane.b32.xlu0 %v1492_v24, %s4279_s3  ;;  %v3798_v24 = vld [vmem:[%s4670_s26 + $0xe4] ss:$16 sps:$4 sm:$0xff]  }
 0x979   : > { %2215 = vmatprep.subr.bf16.mxu1 %v3798_v24  ;;  %v3848_v24 = vld [vmem:[%s4672_s22 + $0x70] sm:$0xff]  }
 0x9eb   : > { %v1757_v60 = vpop.xlane.xlu0 %1756 }
 0x9ec   : > { %3890 = vrcp.f32 %v1757_v60  ;;  %v3837_v60 = vld [vmem:[%s4670_s26 + $0x2c] ss:$16 sps:$4 sm:$0xff]  }
 0x9ef   : > { %v1498_v49 = vpop.permute.xlu0 %1497 }
 0x9f0   : > { %1501 = vst.msk [vmem:[#allocation3] sm:$0xff] %vm1500_vm3, %v1498_v49  ;;  %v3832_v49 = vld [vmem:[%s4670_s26 + $0x20] ss:$16 sps:$4 sm:$0xff]  }
 0x9f7   : > { %v1842_v12 = vld [vmem:[#allocation3] sm:$0xff] }
 0x9f9   : > { %v3891_v61 = vpop.eup %3890 }
 0x9fa   : > { %v1759_v62 = vmul.f32 %v3891_v61, %v3889_v58  ;;  %v3829_v58 = vld [vmem:[%s4670_s26 + $0x48] ss:$16 sps:$4 sm:$0xff]  }
 0x9fb   : > { %v3835_v61 = vld [vmem:[%s4670_s26 + $0x28] ss:$16 sps:$4 sm:$0xff]  }
 0x9fc   : > { %3566 = vmatmul.mubr.msk.f32.vlgmr.msra.gmra.mxu1 %vm1244_vm2, %v1759_v62  ;;  %v3840_v62 = vld [vmem:[%s4670_s26 + $0x4] ss:$16 sps:$4 sm:$0xff]  }
 0x9fd   : > { %2247 = vmatprep.mubr.bf16.mxu1 %v4276_v4  ;;  %2216 = vmatpush1.bf16.msra.mxu1 %v3796_v23  ;;  %v3847_v23 = vld [vmem:[%s4672_s22 + $0xb8] sm:$0xff]  }
 0x9fe   : > { %2217 = vmatprep.subr.bf16.mxu1 %v3804_v37  ;;  %v3859_v37 = vld [vmem:[%s4672_s22 + $0xa0] sm:$0xff]  }
 0xa01   : > { %2218 = vmatpush1.bf16.msra.mxu1 %v3802_v39  ;;  %v3861_v39 = vld [vmem:[%s4672_s22 + $0xd8] sm:$0xff]  }
 0xa02   : > { %2219 = vmatprep.subr.bf16.mxu1 %v3810_v41  ;;  %v3863_v41 = vld [vmem:[%s4672_s22 + $0x98] sm:$0xff]  }
 0xa05   : > { %2220 = vmatpush1.bf16.msra.mxu1 %v3808_v44  ;;  %v3865_v44 = vld [vmem:[%s4672_s22 + $0xd0] sm:$0xff]  }
 0xa06   : > { %2221 = vmatprep.subr.bf16.mxu1 %v3816_v47  ;;  %v3868_v47 = vld [vmem:[%s4672_s22 + $0x48] sm:$0xff]  }
 0xa09   : > { %2222 = vmatpush1.bf16.msra.mxu1 %v3814_v46  ;;  %v3867_v46 = vld [vmem:[%s4672_s22 + $0x90] sm:$0xff]  }
 0xa0a   : > { %2223 = vmatprep.subr.bf16.mxu1 %v3822_v51  ;;  %v3871_v51 = vld [vmem:[%s4672_s22 + $0x88] sm:$0xff]  }
 0xa0d   : > { %2224 = vmatpush1.bf16.msra.mxu1 %v3820_v53  ;;  %v3873_v53 = vld [vmem:[%s4672_s22 + $0xc0] sm:$0xff]  }
 0xa0e   : > { %2225 = vmatprep.subr.bf16.mxu1 %v3828_v55  ;;  %v3875_v55 = vld [vmem:[%s4672_s22 + $0x80] sm:$0xff]  }
 0xa11   : > { %2226 = vmatpush1.bf16.msra.mxu1 %v3826_v57  ;;  %v2049_v57 = vsub.s32 3, %v4765_v32 }
 0xa12   : > { %2227 = vmatprep.subr.bf16.mxu1 %v3834_v59 }
 0xa15   : > { %2228 = vmatpush1.bf16.msra.mxu1 %v3832_v49 }
 0xa16   : > { %2229 = vmatprep.subr.bf16.mxu1 %v3840_v62 }
 0xa19   : > { %2230 = vmatpush1.bf16.msra.mxu1 %v3838_v0 }
 0xabc   : > { %v1833_v9 = vpop.f32.mrf.mxu1 }
 0xabd   : > { %1838 = vrot.lane.b32.xlu1 %v1833_v9, %s4279_s3 }
 0xabe   : > { %v3567_v10 = vpop.f32.mrf.mxu1 }
 0xb2f   : > { %v1839_v11 = vpop.permute.xlu1 %1838 }
 0xb30   : > { %1841 = vst.msk [vmem:[#allocation3 + $0x8] sm:$0xff] %vm1500_vm3, %v1839_v11 }
 0xb37   : > { %v1843_v13 = vld [vmem:[#allocation3 + $0x8] sm:$0xff] }
 0xb38   : > { %v1844_v14 = vpack.c.bf16 %v1843_v13, %v1842_v12  ;;  %v3317_v12 = vld [vmem:[%s5135_s20] ss:$0 sm:$0xff] }
 0xb3a   : > { %3585 = vmatmul.mubr.bf16.vlgmr.msra.gmra.mxu0 %v1844_v14 }
 0xb3b   : > { %2290 = vmatprep.mubr.bf16.mxu0 %v4276_v4  ;;  %v3799_v4 = vld [vmem:[%s4670_s26 + $0xe8] ss:$16 sps:$4 sm:$0xff]  }
 0xb3c   : > { %2259 = vmatpush1.bf16.msra.mxu0 %v3799_v4  ;;  %v3849_v4 = vld [vmem:[%s4672_s22 + $0xf0] sm:$0xff]  }
 0xb3d   : > { %2260 = vmatprep.subr.bf16.mxu0 %v3807_v38  ;;  %v3860_v38 = vld [vmem:[%s4672_s22 + $0x58] sm:$0xff]  }
 0xb40   : > { %2261 = vmatpush1.bf16.msra.mxu0 %v3805_v40  ;;  %v3862_v40 = vld [vmem:[%s4672_s22 + $0x18] sm:$0xff]  }
 0xb41   : > { %2262 = vmatprep.subr.bf16.mxu0 %v3813_v43  ;;  %v3864_v43 = vld [vmem:[%s4672_s22 + $0x50] sm:$0xff]  }
 0xb44   : > { %2263 = vmatpush1.bf16.msra.mxu0 %v3811_v45  ;;  %v3866_v45 = vld [vmem:[%s4672_s22 + $0x10] sm:$0xff]  }
 0xb45   : > { %2264 = vmatprep.subr.bf16.mxu0 %v3819_v50  ;;  %v3870_v50 = vld [vmem:[%s4672_s22 + $0x8] sm:$0xff]  }
 0xb48   : > { %2265 = vmatpush1.bf16.msra.mxu0 %v3817_v48  ;;  %v3869_v48 = vld [vmem:[%s4672_s22 + $0xc8] sm:$0xff]  }
 0xb49   : > { %2266 = vmatprep.subr.bf16.mxu0 %v3825_v52  ;;  %v3872_v52 = vld [vmem:[%s4672_s22 + $0x40] sm:$0xff]  }
 0xb4c   : > { %2267 = vmatpush1.bf16.msra.mxu0 %v3823_v54  ;;  %v3874_v54 = vld [vmem:[%s4672_s22] sm:$0xff]  }
 0xb4d   : > { %2268 = vmatprep.subr.bf16.mxu0 %v3831_v56  ;;  %v2033_v56 = vld [vmem:[%s4702_s17] sm:$0xf] }
 0xb4e   : > { %v2046_v59 = vrot.slane %v2033_v56, %v941_v42  ;;  %v2050_v49 = vrot.slane %v2033_v56, %v2049_v57 }
 0xb50   : > { %2269 = vmatpush1.bf16.msra.mxu0 %v3829_v58  ;;  %v2038_v58 = vrot.slane %v2033_v56, %v933_v33 }
 0xb51   : > { %2270 = vmatprep.subr.bf16.mxu0 %v3837_v60  ;;  %v2042_v60 = vrot.slane %v2033_v56, %v937_v35 }
 0xb54   : > { %2271 = vmatpush1.bf16.msra.mxu0 %v3835_v61 }
 0xb55   : > { %2272 = vmatprep.subr.bf16.mxu0 %v3843_v63 }
 0xb58   : > { %2273 = vmatpush1.bf16.msra.mxu0 %v3841_v1 }
 0xbfa   : > { %v1950_v15 = vpop.f32.mrf.mxu0 }
 0xbfb   : > { %v1951_v16 = vadd.f32 %v3308_v5, %v1950_v15  ;;  %v3318_v15 = vld [vmem:[%s871_s18] ss:$0 sm:$0xff] }
 0xbfc   : > { %v3586_v17 = vpop.f32.mrf.mxu0 }
 0xbfd   : > { %v1957_v18 = vadd.f32 %v1951_v16, %v4746_v25 }
 0xbfe   : > { %v1953_v19 = vpop.f32.mrf.mxu0 }
 0xbff   : > { %v1954_v20 = vadd.f32 %v3308_v5, %v1953_v19  ;;  %1961 = vadd.xlane.f32.xlu1 %v1957_v18 }
 0xc00   : > { %v3587_v21 = vpop.f32.mrf.mxu0 }
 0xc01   : > { %v1958_v22 = vadd.f32 %v1954_v20, %v4748_v26  ;;  %v3844_v20 = vld [vmem:[%s4672_s22 + $0x78] sm:$0xff]  }
 0xc02   : > { %v3845_v21 = vld [vmem:[%s4672_s22 + $0xf8] sm:$0xff]   ;;  %3446 = vmatprep.subr.bf16.mxu1 %v3844_v20 }
 0xc03   : > { %1963 = vadd.xlane.f32.xlu0 %v1958_v22  ;;  %3468 = vmatprep.subr.bf16.mxu0 %v3845_v21 }
 0xc88   : > { %v1962_v25 = vpop.xlane.xlu1 %1961 }
 0xc89   : > { %v1966_v28 = vmul.f32 0.0078125, %v1962_v25  ;;  %v3851_v25 = vld [vmem:[%s4672_s22 + $0xb0] sm:$0xff]  }
 0xc8b   : > { %v4870_v29 = vsub.f32 %v1957_v18, %v1966_v28  ;;  %v3852_v28 = vld [vmem:[%s4672_s22 + $0x68] sm:$0xff]  }
 0xc8c   : > { %v1964_v30 = vpop.xlane.xlu0 %1963 }
 0xc8d   : > { %v1967_v26 = vmul.f32 0.0078125, %v1964_v30  ;;  %v1970_v31 = vmul.f32 %v4870_v29, %v4870_v29  ;;  %v3854_v30 = vld [vmem:[%s4672_s22 + $0x28] sm:$0xff]  }
 0xc8f   : > { %v4874_v34 = vsub.f32 %v1958_v22, %v1967_v26  ;;  %1972 = vadd.xlane.f32.xlu1 %v1970_v31  ;;  %v3846_v22 = vld [vmem:[%s4672_s22 + $0x38] sm:$0xff]   ;;  %v3855_v26 = vld [vmem:[%s4672_s22 + $0xa8] sm:$0xff]   ;;  %v3856_v31 = vld [vmem:[%s4672_s22 + $0x60] sm:$0xff]  }
 0xc91   : > { %v1971_v36 = vmul.f32 %v4874_v34, %v4874_v34 }
 0xc93   : > { %1974 = vadd.xlane.f32.xlu1 %v1971_v36  ;;  %v3858_v36 = vld [vmem:[%s4672_s22 + $0x20] sm:$0xff]  }
 0xd18   : > { %v1973_v2 = vpop.xlane.xlu1 %1972 }
 0xd19   : > { %v1976_v3 = vmul.f32 0.0078125, %v1973_v2 }
 0xd1b   : > { %v1978_v6 = vadd.f32 1e-12, %v1976_v3 }
 0xd1c   : > { %v1975_v7 = vpop.xlane.xlu1 %1974 }
 0xd1d   : > { %3892 = vrsqrt.f32 %v1978_v6  ;;  %v1977_v8 = vmul.f32 0.0078125, %v1975_v7 }
 0xd1f   : > { %v1979_v9 = vadd.f32 1e-12, %v1977_v8 }
 0xd21   : > { %3894 = vrsqrt.f32 %v1979_v9 }
 0xd2a   : > { %v3893_v10 = vpop.eup %3892 }
 0xd2b   : > { %v1982_v11 = vmul.f32 %v3893_v10, %v4870_v29  ;;  %v3853_v29 = vld [vmem:[%s4672_s22 + $0xe8] sm:$0xff]  }
 0xd2d   : > { %v1990_v5 = vmul.f32 %v3317_v12, %v1982_v11 }
 0xd2e   : > { %v3895_v13 = vpop.eup %3894 }
 0xd2f   : > { %v1983_v14 = vmul.f32 %v3895_v13, %v4874_v34  ;;  %v4918_v17 = vadd.f32 %v3318_v15, %v1990_v5  ;;  %v3857_v34 = vld [vmem:[%s4672_s22 + $0xe0] sm:$0xff]  }
 0xd31   : > { %v1991_v16 = vmul.f32 %v3317_v12, %v1983_v14 }
 0xd33   : > { %v4920_v18 = vadd.f32 %v3318_v15, %v1991_v16 }
 0xd35   : > { %v2000_v19 = vpack.c.bf16 %v4920_v18, %v4918_v17 }
 0xd37   : > { %2248 = vmatmul.mubr.bf16.vlgmr.msra.gmra.mxu1 %v2000_v19  ;;  %2291 = vmatmul.mubr.bf16.vlgmr.msra.gmra.mxu0 %v2000_v19 }
 0xd38   : > { %3447 = vmatpush3.bf16.msra.mxu1 %v3846_v22  ;;  %3469 = vmatpush3.bf16.msra.mxu0 %v3847_v23 }
 0xd39   : > { %3448 = vmatprep.subr.bf16.mxu1 %v3848_v24  ;;  %3470 = vmatprep.subr.bf16.mxu0 %v3849_v4 }
 0xd3c   : > { %3449 = vmatpush3.bf16.msra.mxu1 %v3850_v27  ;;  %3471 = vmatpush3.bf16.msra.mxu0 %v3851_v25 }
 0xd3d   : > { %3450 = vmatprep.subr.bf16.mxu1 %v3852_v28  ;;  %3472 = vmatprep.subr.bf16.mxu0 %v3853_v29 }
 0xd40   : > { %3451 = vmatpush3.bf16.msra.mxu1 %v3854_v30  ;;  %3473 = vmatpush3.bf16.msra.mxu0 %v3855_v26 }
 0xd41   : > { %3452 = vmatprep.subr.bf16.mxu1 %v3856_v31  ;;  %3474 = vmatprep.subr.bf16.mxu0 %v3857_v34 }
 0xd44   : > { %3453 = vmatpush3.bf16.msra.mxu1 %v3858_v36  ;;  %3475 = vmatpush3.bf16.msra.mxu0 %v3859_v37 }
 0xd45   : > { %3454 = vmatprep.subr.bf16.mxu1 %v3860_v38  ;;  %3476 = vmatprep.subr.bf16.mxu0 %v3861_v39 }
 0xd48   : > { %3455 = vmatpush3.bf16.msra.mxu1 %v3862_v40  ;;  %3477 = vmatpush3.bf16.msra.mxu0 %v3863_v41 }
 0xd49   : > { %3456 = vmatprep.subr.bf16.mxu1 %v3864_v43  ;;  %3478 = vmatprep.subr.bf16.mxu0 %v3865_v44 }
 0xd4c   : > { %3457 = vmatpush3.bf16.msra.mxu1 %v3866_v45  ;;  %3479 = vmatpush3.bf16.msra.mxu0 %v3867_v46 }
 0xd4d   : > { %3458 = vmatprep.subr.bf16.mxu1 %v3868_v47  ;;  %3480 = vmatprep.subr.bf16.mxu0 %v3869_v48 }
 0xd50   : > { %3459 = vmatpush3.bf16.msra.mxu1 %v3870_v50  ;;  %3481 = vmatpush3.bf16.msra.mxu0 %v3871_v51 }
 0xd51   : > { %3460 = vmatprep.subr.bf16.mxu1 %v3872_v52  ;;  %3482 = vmatprep.subr.bf16.mxu0 %v3873_v53 }
 0xd54   : > { %3461 = vmatpush3.bf16.msra.mxu1 %v3874_v54  ;;  %3483 = vmatpush3.bf16.msra.mxu0 %v3875_v55 }
 0xdf7   : > { %v2249_v61 = vpop.f32.mrf.mxu1  ;;  %v2292_v62 = vpop.f32.mrf.mxu0 }
 0xdf8   : > { %v4964_v63 = vadd.f32 %v2249_v61, %v2038_v58  ;;  %v4966_v0 = vadd.f32 %v2292_v62, %v2046_v59 }
 0xdf9   : > { %v2251_v1 = vpop.f32.mrf.mxu1  ;;  %v2294_v2 = vpop.f32.mrf.mxu0 }
 0xdfa   : > { %v2309_v3 = vmul.f32 0.044715, %v4964_v63  ;;  %v2311_v6 = vmul.f32 0.044715, %v4966_v0  ;;  %v2252_v33 = vadd.f32 %v2251_v1, %v2042_v60  ;;  %v4970_v7 = vadd.f32 %v2294_v2, %v2050_v49 }
 0xdfb   : > { %v2253_v42 = vpop.f32.mrf.mxu1  ;;  %v2296_v8 = vpop.f32.mrf.mxu0  ;;  %v2301_v1 = vmul.f32 0.5, %v4964_v63 }
 0xdfc   : > { %v2317_v32 = vmul.f32 %v2309_v3, %v4964_v63  ;;  %v2319_v35 = vmul.f32 %v2311_v6, %v4966_v0  ;;  %v2310_v9 = vmul.f32 0.044715, %v2252_v33  ;;  %v2312_v10 = vmul.f32 0.044715, %v4970_v7 }
 0xdfd   : > { %v2254_v11 = vadd.f32 %v2253_v42, %v2038_v58  ;;  %v4975_v12 = vadd.f32 %v2296_v8, %v2046_v59  ;;  %v2255_v13 = vpop.f32.mrf.mxu1  ;;  %v2298_v14 = vpop.f32.mrf.mxu0  ;;  %v2302_v61 = vmul.f32 0.5, %v2252_v33 }
 0xdfe   : > { %v2325_v5 = vmul.f32 %v2317_v32, %v4964_v63  ;;  %v2327_v15 = vmul.f32 %v2319_v35, %v4966_v0  ;;  %v2318_v16 = vmul.f32 %v2310_v9, %v2252_v33  ;;  %v2320_v19 = vmul.f32 %v2312_v10, %v4970_v7 }
 0xdff   : > { %v2313_v20 = vmul.f32 0.044715, %v2254_v11  ;;  %v2315_v21 = vmul.f32 0.044715, %v4975_v12  ;;  %v2256_v22 = vadd.f32 %v2255_v13, %v2042_v60  ;;  %v2299_v23 = vadd.f32 %v2298_v14, %v2050_v49 }
 0xe00   : > { %v2333_v24 = vadd.f32 %v2325_v5, %v4964_v63  ;;  %v2335_v4 = vadd.f32 %v2327_v15, %v4966_v0  ;;  %v2326_v27 = vmul.f32 %v2318_v16, %v2252_v33  ;;  %v2328_v25 = vmul.f32 %v2320_v19, %v4970_v7 }
 0xe01   : > { %v2321_v28 = vmul.f32 %v2313_v20, %v2254_v11  ;;  %v2323_v29 = vmul.f32 %v2315_v21, %v4975_v12  ;;  %v2314_v30 = vmul.f32 0.044715, %v2256_v22  ;;  %v2316_v26 = vmul.f32 0.044715, %v2299_v23 }
 0xe02   : > { %v2341_v31 = vmul.f32 0.7978846, %v2333_v24  ;;  %v2343_v34 = vmul.f32 0.7978846, %v2335_v4  ;;  %v2334_v36 = vadd.f32 %v2326_v27, %v2252_v33  ;;  %v2336_v43 = vadd.f32 %v2328_v25, %v4970_v7 }
 0xe03   : > { %v2329_v37 = vmul.f32 %v2321_v28, %v2254_v11  ;;  %v2331_v38 = vmul.f32 %v2323_v29, %v4975_v12  ;;  %v2322_v39 = vmul.f32 %v2314_v30, %v2256_v22  ;;  %v2324_v40 = vmul.f32 %v2316_v26, %v2299_v23 }
 0xe04   : > { %v2342_v41 = vmul.f32 0.7978846, %v2334_v36  ;;  %3896 = vtanh.f32 %v2341_v31  ;;  %v2344_v48 = vmul.f32 0.7978846, %v2336_v43  ;;  %v2305_v42 = vmul.f32 0.5, %v2254_v11 }
 0xe05   : > { %v2337_v44 = vadd.f32 %v2329_v37, %v2254_v11  ;;  %v2339_v45 = vadd.f32 %v2331_v38, %v4975_v12  ;;  %v2330_v46 = vmul.f32 %v2322_v39, %v2256_v22  ;;  %3898 = vtanh.f32 %v2343_v34 }
 0xe06   : > { %v2332_v47 = vmul.f32 %v2324_v40, %v2299_v23  ;;  %3900 = vtanh.f32 %v2342_v41  ;;  %v2306_v9 = vmul.f32 0.5, %v2256_v22  ;;  %v2307_v13 = vmul.f32 0.5, %v4975_v12 }
 0xe07   : > { %v2345_v50 = vmul.f32 0.7978846, %v2337_v44  ;;  %v2347_v51 = vmul.f32 0.7978846, %v2339_v45  ;;  %v2338_v52 = vadd.f32 %v2330_v46, %v2256_v22  ;;  %3902 = vtanh.f32 %v2344_v48 }
 0xe08   : > { %v2340_v53 = vadd.f32 %v2332_v47, %v2299_v23  ;;  %v2304_v5 = vmul.f32 0.5, %v4970_v7  ;;  %v2308_v15 = vmul.f32 0.5, %v2299_v23  ;;  %v2303_v63 = vmul.f32 0.5, %v4966_v0  ;;  %v3351_v0 = vld [vmem:[%s878_s4] ss:$0 sm:$0xff] }
 0xe09   : > { %3904 = vtanh.f32 %v2345_v50  ;;  %v2346_v54 = vmul.f32 0.7978846, %v2338_v52 }
 0xe0a   : > { %3906 = vtanh.f32 %v2347_v51  ;;  %v2348_v55 = vmul.f32 0.7978846, %v2340_v53 }
 0xe0b   : > { %3908 = vtanh.f32 %v2346_v54 }
 0xe0c   : > { %3910 = vtanh.f32 %v2348_v55 }
 0xe11   : > { %v3897_v56 = vpop.eup %3896 }
 0xe12   : > { %v3899_v57 = vpop.eup %3898  ;;  %v2357_v8 = vadd.f32 1.0, %v3897_v56 }
 0xe13   : > { %v3901_v58 = vpop.eup %3900  ;;  %v2359_v14 = vadd.f32 1.0, %v3899_v57 }
 0xe14   : > { %v3903_v59 = vpop.eup %3902  ;;  %v2358_v62 = vadd.f32 1.0, %v3901_v58  ;;  %v2365_v4 = vmul.f32 %v2357_v8, %v2301_v1  ;;  %v3385_v1 = vld [vmem:[%s884_s29] ss:$0 sm:$0xff]  ;;  %s5140_s29 = sld [smem:[#allocation42_spill]] (!%p3386_p11) }
 0xe15   : > { %v2360_v6 = vadd.f32 1.0, %v3903_v59  ;;  %v2367_v22 = vmul.f32 %v2359_v14, %v2303_v63 }
 0xe16   : > { %v3905_v60 = vpop.eup %3904  ;;  %v2366_v19 = vmul.f32 %v2358_v62, %v2302_v61  ;;  %v3384_v61 = vld [vmem:[%s881_s10] ss:$0 sm:$0xff] }
 0xe17   : > { %v3907_v49 = vpop.eup %3906  ;;  %v2361_v2 = vadd.f32 1.0, %v3905_v60  ;;  %v2368_v11 = vmul.f32 %v2360_v6, %v2304_v5 }
 0xe18   : > { %v3909_v3 = vpop.eup %3908  ;;  %v2363_v32 = vadd.f32 1.0, %v3907_v49 }
 0xe19   : > { %v3911_v35 = vpop.eup %3910  ;;  %v2362_v10 = vadd.f32 1.0, %v3909_v3  ;;  %v2369_v33 = vmul.f32 %v2361_v2, %v2305_v42 }
 0xe1a   : > { %v2364_v16 = vadd.f32 1.0, %v3911_v35  ;;  %v2371_v21 = vmul.f32 %v2363_v32, %v2307_v13 }
 0xe1b   : > { %v2370_v20 = vmul.f32 %v2362_v10, %v2306_v9  ;;  %v2373_v28 = vpack.c.bf16 %v2369_v33, %v2365_v4 }
 0xe1c   : > { %v2372_v24 = vmul.f32 %v2364_v16, %v2308_v15  ;;  %v2375_v12 = vpack.c.bf16 %v2371_v21, %v2367_v22 }
 0xe1d   : > { %v2374_v27 = vpack.c.bf16 %v2370_v20, %v2366_v19 }
 0xe1e   : > { %v2376_v25 = vpack.c.bf16 %v2372_v24, %v2368_v11 }
 0xe1f   : > { %2672 = vmatprep.mubr.bf16.mxu1 %v2374_v27 }
 0xe20   : > { %2713 = vmatprep.mubr.bf16.mxu0 %v2376_v25  ;;  %2673 = vmatmul.mubr.bf16.vlgmr.msra.gmra.mxu1 %v2373_v28 }
 0xe21   : > { %2714 = vmatmul.mubr.bf16.vlgmr.msra.gmra.mxu0 %v2375_v12 }
 0xee0   : > { %v3462_v7 = vpop.f32.mrf.mxu1 }
 0xee1   : > { %v3484_v23 = vpop.f32.mrf.mxu0 }
 0xee2   : > { %v3463_v29 = vpop.f32.mrf.mxu1 }
 0xee3   : > { %v3464_v30 = vadd.f32 %v3463_v29, %v3462_v7  ;;  %v3485_v26 = vpop.f32.mrf.mxu0 }
 0xee4   : > { %v3465_v31 = vpop.f32.mrf.mxu1  ;;  %v3486_v36 = vadd.f32 %v3485_v26, %v3484_v23 }
 0xee5   : > { %v2675_v34 = vadd.f32 %v3464_v30, %v3351_v0  ;;  %v3487_v37 = vpop.f32.mrf.mxu0 }
 0xee6   : > { %v3466_v38 = vpop.f32.mrf.mxu1 }
 0xee7   : > { %v2716_v39 = vadd.f32 %v3486_v36, %v2675_v34  ;;  %v3467_v40 = vadd.f32 %v3466_v38, %v3465_v31  ;;  %v3488_v41 = vpop.f32.mrf.mxu0 }
 0xee8   : > { %v3489_v44 = vadd.f32 %v3488_v41, %v3487_v37 }
 0xee9   : > { %v2678_v43 = vadd.f32 %v3467_v40, %v3351_v0  ;;  %v2722_v45 = vadd.f32 %v2716_v39, %v4918_v17 }
 0xeeb   : > { %v2719_v46 = vadd.f32 %v3489_v44, %v2678_v43  ;;  %2726 = vadd.xlane.f32.xlu1 %v2722_v45 }
 0xeed   : > { %v2723_v47 = vadd.f32 %v2719_v46, %v4920_v18 }
 0xeef   : > { %2728 = vadd.xlane.f32.xlu1 %v2723_v47 }
 0xf74   : > { %v2727_v48 = vpop.xlane.xlu1 %2726 }
 0xf75   : > { %v2730_v50 = vmul.f32 0.0078125, %v2727_v48 }
 0xf77   : > { %v2732_v51 = vsub.f32 %v2722_v45, %v2730_v50 }
 0xf78   : > { %v2729_v52 = vpop.xlane.xlu1 %2728 }
 0xf79   : > { %v2731_v53 = vmul.f32 0.0078125, %v2729_v52  ;;  %v2734_v54 = vmul.f32 %v2732_v51, %v2732_v51 }
 0xf7b   : > { %v2733_v55 = vsub.f32 %v2723_v47, %v2731_v53  ;;  %2736 = vadd.xlane.f32.xlu0 %v2734_v54 }
 0xf7d   : > { %v2735_v56 = vmul.f32 %v2733_v55, %v2733_v55 }
 0xf7f   : > { %2738 = vadd.xlane.f32.xlu1 %v2735_v56 }
0x1004   : > { %v2737_v57 = vpop.xlane.xlu0 %2736 }
0x1005   : > { %v2740_v58 = vmul.f32 0.0078125, %v2737_v57 }
0x1007   : > { %v2742_v17 = vadd.f32 1e-12, %v2740_v58 }
0x1008   : > { %v2739_v59 = vpop.xlane.xlu1 %2738 }
0x1009   : > { %3912 = vrsqrt.f32 %v2742_v17  ;;  %v2741_v60 = vmul.f32 0.0078125, %v2739_v59 }
0x100b   : > { %v2743_v18 = vadd.f32 1e-12, %v2741_v60 }
0x100d   : > { %3914 = vrsqrt.f32 %v2743_v18 }
0x1016   : > { %v3913_v49 = vpop.eup %3912 }
0x1017   : > { %v2746_v62 = vmul.f32 %v3913_v49, %v2732_v51 }
0x1019   : > { %v2754_v2 = vmul.f32 %v3384_v61, %v2746_v62 }
0x101a   : > { %v3915_v3 = vpop.eup %3914 }
0x101b   : > { %v2762_v6 = vadd.f32 %v3385_v1, %v2754_v2  ;;  %v2747_v42 = vmul.f32 %v3915_v3, %v2733_v55 }
0x101d   : > { %2764 = vst [vmem:[#allocation2] sm:$0xff] %v2762_v6  ;;  %v2755_v8 = vmul.f32 %v3384_v61, %v2747_v42  ;;  %2769 = sbr.rel (%p3386_p11) target bundleno = 4573 (0x11dd), region = 136 }
0x101f   : > { %v2763_v32 = vadd.f32 %v3385_v1, %v2755_v8 }
0x1021   : > { %2765 = vst [vmem:[#allocation2 + $0x8] sm:$0xff] %v2763_v32 }
0x1022   : > { %v3916_v35 = vld [vmem:[#allocation14 + $0x38] sm:$0xff]   ;;  %v4280_v9 = vmov 0.0   ;;  %v3917_v10 = vld [vmem:[#allocation14 + $0x30] sm:$0xff]   ;;  %vm4281_vm4 = vmmov 0   ;;  %v3918_v13 = vld [vmem:[#allocation14 + $0x28] sm:$0xff]   ;;  %v2771_v63 = vrot.slane %v2763_v32, 7 }
0x1023   : > { %3588 = vmatprep.subr.bf16.mxu0 %v4280_v9  ;;  %3608 = vmatprep.subr.bf16.mxu1 %v4280_v9  ;;  %v3924_v14 = vld [vmem:[#allocation15 + $0x38] sm:$0xff]   ;;  %v3919_v5 = vld [vmem:[#allocation14 + $0x20] sm:$0xff]   ;;  %v3925_v15 = vld [vmem:[#allocation15 + $0x30] sm:$0xff]   ;;  %vm2773_vm5 = vcmask 1040384  }
0x1024   : > { %3589 = vmatpush3.bf16.msra.mxu0 %v3916_v35  ;;  %3604 = vmatprep.mubr.msk.bf16.mxu0 %vm4281_vm4, %v4280_v9  ;;  %v3920_v16 = vld [vmem:[#allocation14 + $0x18] sm:$0xff]   ;;  %v3926_v33 = vld [vmem:[#allocation15 + $0x28] sm:$0xff]   ;;  %v3921_v19 = vld [vmem:[#allocation14 + $0x10] sm:$0xff]   ;;  %v2774_v11 = vsel %vm2773_vm5, %v2762_v6, %v2771_v63 }
0x1025   : > { %3590 = vmatprep.subr.bf16.mxu0 %v4280_v9  ;;  %3624 = vmatprep.mubr.msk.bf16.mxu1 %vm4281_vm4, %v4280_v9  ;;  %v3922_v20 = vld [vmem:[#allocation14 + $0x8] sm:$0xff]   ;;  %v3923_v21 = vld [vmem:[#allocation14] sm:$0xff]   ;;  %v2775_v24 = vpack.c.bf16 %v2774_v11, %v2774_v11  ;;  %v3928_v27 = vld [vmem:[#allocation15 + $0x18] sm:$0xff]  }
0x1026   : > { %3609 = vmatpush3.bf16.msra.mxu1 %v3924_v14  ;;  %v3927_v4 = vld [vmem:[#allocation15 + $0x20] sm:$0xff]   ;;  %v3929_v22 = vld [vmem:[#allocation15 + $0x10] sm:$0xff]   ;;  %v3930_v25 = vld [vmem:[#allocation15 + $0x8] sm:$0xff]  }
0x1027   : > { %3610 = vmatprep.subr.bf16.mxu1 %v4280_v9  ;;  %v3931_v28 = vld [vmem:[#allocation15] sm:$0xff]   ;;  %v3387_v12 = vld [vmem:[%s5140_s29] ss:$0 sm:$0xff] }
0x1028   : > { %3591 = vmatpush3.bf16.msra.mxu0 %v3917_v10  ;;  %v3396_v34 = vld [vmem:[%s5141_s27] ss:$0 sm:$0xff] }
0x1029   : > { %3592 = vmatprep.subr.bf16.mxu0 %v4280_v9 }
0x102a   : > { %3611 = vmatpush3.bf16.msra.mxu1 %v3925_v15 }
0x102b   : > { %3612 = vmatprep.subr.bf16.mxu1 %v4280_v9 }
0x102c   : > { %3593 = vmatpush3.bf16.msra.mxu0 %v3918_v13 }
0x102d   : > { %3594 = vmatprep.subr.bf16.mxu0 %v4280_v9 }
0x102e   : > { %3613 = vmatpush3.bf16.msra.mxu1 %v3926_v33 }
0x102f   : > { %3614 = vmatprep.subr.bf16.mxu1 %v4280_v9 }
0x1030   : > { %3595 = vmatpush3.bf16.msra.mxu0 %v3919_v5 }
0x1031   : > { %3596 = vmatprep.subr.bf16.mxu0 %v4280_v9 }
0x1032   : > { %3615 = vmatpush3.bf16.msra.mxu1 %v3927_v4 }
0x1033   : > { %3616 = vmatprep.subr.bf16.mxu1 %v4280_v9 }
0x1034   : > { %3597 = vmatpush3.bf16.msra.mxu0 %v3920_v16 }
0x1035   : > { %3598 = vmatprep.subr.bf16.mxu0 %v4280_v9 }
0x1036   : > { %3617 = vmatpush3.bf16.msra.mxu1 %v3928_v27 }
0x1037   : > { %3618 = vmatprep.subr.bf16.mxu1 %v4280_v9 }
0x1038   : > { %3599 = vmatpush3.bf16.msra.mxu0 %v3921_v19 }
0x1039   : > { %3600 = vmatprep.subr.bf16.mxu0 %v4280_v9 }
0x103a   : > { %3619 = vmatpush3.bf16.msra.mxu1 %v3929_v22 }
0x103b   : > { %3620 = vmatprep.subr.bf16.mxu1 %v4280_v9 }
0x103c   : > { %3601 = vmatpush3.bf16.msra.mxu0 %v3922_v20 }
0x103d   : > { %3602 = vmatprep.subr.bf16.mxu0 %v4280_v9 }
0x103e   : > { %3621 = vmatpush3.bf16.msra.mxu1 %v3930_v25 }
0x103f   : > { %3622 = vmatprep.subr.bf16.mxu1 %v4280_v9 }
0x1040   : > { %3603 = vmatpush3.bf16.msra.mxu0 %v3923_v21 }
0x1042   : > { %3623 = vmatpush3.bf16.msra.mxu1 %v3931_v28 }
0x1043   : > { %3605 = vmatmul.mubr.bf16.vlgmr.msra.gmra.mxu0 %v2775_v24 }
0x1103   : > { %v2881_v7 = vpop.f32.mrf.mxu0 }
0x1104   : > { %v2882_v23 = vadd.f32 %v3387_v12, %v2881_v7 }
0x1105   : > { %v3606_v0 = vpop.f32.mrf.mxu0 }
0x1106   : > { %3932 = vtanh.f32 %v2882_v23 }
0x1107   : > { %v2884_v29 = vpop.f32.mrf.mxu0 }
0x1109   : > { %v3607_v30 = vpop.f32.mrf.mxu0 }
0x1113   : > { %v3933_v26 = vpop.eup %3932 }
0x1114   : > { %v2888_v31 = vpack.c.bf16 %v3933_v26, %v3933_v26 }
0x1116   : > { %3625 = vmatmul.mubr.bf16.vlgmr.msra.gmra.mxu1 %v2888_v31 }
0x11d6   : > { %v2994_v36 = vpop.f32.mrf.mxu1 }
0x11d7   : > { %v2995_v37 = vadd.f32 %v3396_v34, %v2994_v36 }
0x11d8   : > { %v3626_v38 = vpop.f32.mrf.mxu1 }
0x11d9   : > { %3000 = vst [vmem:[#allocation17] sm:$0x3] %v2995_v37 }
0x11da   : > { %v2997_v39 = vpop.f32.mrf.mxu1 }
0x11dc   : > { %v3627_v40 = vpop.f32.mrf.mxu1 }
0x11dd PF: > { %p3702_p4 = scmp.eq.s32.totalorder %s4397_s0, 1  ;;  %s4282_s3 = smov [#allocation17]  }
0x11de   : > { %s3008_s8 = sshll.u32 %s4282_s3, 4  ;;  %s3009_s8 = int_to_ptr.vmem [resolvable:$true] %s3008_s8 }
0x11df   : > { %s4178_s6 = scalar_lea.vmem %s3009_s8, 32  ;;  %p4185_p5 = scmp.lt.s32.totalorder %s3009_s8, %s3009_s8 }
0x11e0   : > { %p4179_p9 = scmp.ne.s32.totalorder %s3009_s8, %s4178_s6  ;;  %p4186_p8 = scmp.lt.s32.totalorder %s4178_s6, %s4178_s6 }
0x11e2   : > { %p4180_p13 = pnand %p4179_p9, %p3702_p4  ;;  %p4187_p1 = por %p4186_p8, %p4185_p5 }
0x11e4   : > { %p4181_p0 = pneg %p4180_p13 }
0x11e6   : > { %p4188_p10 = pnand %p4187_p1, %p4181_p0 }
0x11e8   : > { %4191 = shalt.err (!%p4188_p10)
}
0x11e9   : > { %s5142_s26 = sld [smem:[#allocation44_spill]] }
0x11ef   : > { %3661 = dma.vmem_to_hbm [thread:$0]  (%p3702_p4), %s3009_s8, 32, %s5142_s26, [#allocation6]  }
0x11f0   : > { %4239 = dma.done.wait (%p3702_p4), [#allocation6], 32  }
0x11f1   : > { %4241 = vsyncadd (%p3702_p4), [#allocation6], 4294967264 }
0x11f2 PF: > { %s5143_s30 = sld [smem:[#allocation25_spill]]  ;;  %s5146_s27 = smov %s4248_s28 }
0x11f3   : > { %s5144_s24 = sld [smem:[#allocation24_spill]] }
0x11f4   : > { %s5145_s29 = sld [smem:[#allocation26_spill]] }
0x11f8   : > { %p29_p12 = scmp.ge.s32.totalorder %s5143_s30, 4  }
0x11f9   : > { %s5147_s28 = smov %s5144_s24 }
0x11fa   :  { %31 = sbr.rel (!%p29_p12) target bundleno = 23 (0x17), region = 218 }
0x11ff   :  { %3021 = vsyncpa [#allocation5], 1 }
0x1200   :  { %3023 = vsyncpa [#allocation5 + $0x1], 1 }
0x1201   :  { %3024 = vsyncpa [#allocation8], 1 }
0x1202   :  { %3025 = vsyncpa [#allocation16], 1 }
0x1203   :  { %3026 = vsyncpa [#allocation6], 1 }
0x1204   :  { %3028 = vsyncpa [#allocation6 + $0x1], 1 }

</bundles_post_ra>
